<compile_context>
chip_gen: v7x
topology: tpu7x:2x2x1
jax: 0.10.0
libtpu: 0.0.40
codegen_flags: <defaults>
</compile_context>

<pallas_src>
import numpy as np
import jax
import jax.numpy as jnp
from jax.experimental import pallas as pl
from jax.experimental.pallas import tpu as pltpu

LANE = 128


def _round_up(x, m):
    return (x + m - 1) // m * m


def _cdiv(a, b):
    return -(-a // b)


# ----------------------------------------------------------------------------
# Pallas kernels
# ----------------------------------------------------------------------------
def gru_layer_kernel(x_ref, wih_ref, whh_ref, bc_ref, bhn_ref, len_ref,
                     o_ref, gi_ref, h_ref):
    """One GRU layer, one (batch tile, time chunk) grid point.

    Grid: (nb, nT); batch axis "parallel", time axis "arbitrary" (sequential,
    hidden state carried in h_ref scratch across time chunks).

    x_ref  : (Tc, Bt, Din)  bf16  time-major activations
    wih_ref: (Din, 3Hp)     bf16
    whh_ref: (Hp, 3Hp)      bf16
    bc_ref : (1, 3Hp)       f32   b_ih + [b_hh_r, b_hh_z, 0]
    bhn_ref: (1, Hp)        f32   b_hh_n
    len_ref: (Bt, 1)        int32
    o_ref  : (Tc, Bt, Hp)   bf16
    gi_ref : (Tc, Bt, 3Hp)  f32   VMEM scratch (precomputed input gates)
    h_ref  : (Bt, Hp)       f32   VMEM scratch (persistent hidden state)
    """
    Tc, Bt, Din = x_ref.shape
    Hp = o_ref.shape[2]
    tc = pl.program_id(1)

    @pl.when(tc == 0)
    def _():
        h_ref[...] = jnp.zeros_like(h_ref)

    # ---- Phase 1: one MXU matmul for the whole time chunk (hoisted).
    x2d = x_ref[...].reshape(Tc * Bt, Din)                    # already bf16
    gi = jnp.dot(x2d, wih_ref[...], preferred_element_type=jnp.float32)
    gi = gi + bc_ref[...]
    gi_ref[...] = gi.reshape(Tc, Bt, 3 * Hp)

    # ---- Phase 2: serial recurrence; only h @ W_hh remains per step.
    bhn = bhn_ref[...]                 # (1, Hp)   loaded once
    len_v = len_ref[...]               # (Bt, 1)   loaded once
    t0 = tc * Tc

    def step(t, h):
        gi_t = gi_ref[t]               # (Bt, 3Hp) lane-aligned gate slabs
        gh = jnp.dot(h.astype(jnp.bfloat16), whh_ref[...],
                     preferred_element_type=jnp.float32)
        # fused r/z sigmoid over the contiguous 2*Hp slab (lane-aligned slices)
        rz = jax.nn.sigmoid(gi_t[:, :2 * Hp] + gh[:, :2 * Hp])
        r = rz[:, :Hp]
        z = rz[:, Hp:]
        n = jnp.tanh(gi_t[:, 2 * Hp:] + r * (gh[:, 2 * Hp:] + bhn))
        h_new = (1.0 - z) * n + z * h
        mask = len_v > (t0 + t)        # valid timestep for each sequence
        o_ref[t] = jnp.where(mask, h_new, 0.0).astype(jnp.bfloat16)
        return jnp.where(mask, h_new, h)

    unroll = True if Tc <= 16 else 4
    h_ref[...] = jax.lax.fori_loop(0, Tc, step, h_ref[...], unroll=unroll)


def proj_kernel(x_ref, w_ref, b_ref, o_ref):
    """Tiled projection: (tm, Hp)bf16 @ (Hp, tn)bf16 + bias, f32 accumulate."""
    o_ref[...] = jnp.dot(x_ref[...], w_ref[...],
                         preferred_element_type=jnp.float32) + b_ref[...]


# ----------------------------------------------------------------------------
# Tiling / VMEM planning
# ----------------------------------------------------------------------------
def _gru_vmem_bytes(Tc, bt, Din, Hp):
    x_blk = Tc * bt * Din * 2              # bf16, double buffered
    o_blk = Tc * bt * Hp * 2               # bf16, double buffered
    gi = Tc * bt * 3 * Hp * 4              # f32 scratch
    h = bt * Hp * 4                        # f32 scratch
    w = (Din * 3 * Hp + Hp * 3 * Hp) * 2   # bf16 weights, single-buffered
    bias = (3 * Hp + Hp) * 4
    lens = bt * 4 * 2
    return 2 * (x_blk + o_blk) + gi + h + w + bias + lens


def _choose_gru_tiling(T, B, Din, Hp):
    """Pick (btile, Bp, Tc, Tp). Prefer >=2 batch tiles (megacore) when the
    batch is large enough, keep the working set under a ~44 MiB budget."""
    Bp8 = _round_up(B, 8)
    if Bp8 >= 32:
        btile = min(128, _round_up(_cdiv(Bp8, 2), 16))
    elif Bp8 >= 16:
        btile = 16
    else:
        btile = Bp8
    Tc = min(_round_up(T, 8), 32)

    budget = 44 * 1024 * 1024
    while _gru_vmem_bytes(Tc, btile, Din, Hp) > budget and Tc > 8:
        Tc //= 2
    while _gru_vmem_bytes(Tc, btile, Din, Hp) > budget and btile > 16:
        btile //= 2

    Bp = _round_up(Bp8, btile)
    Tp = _round_up(T, Tc)
    return btile, Bp, Tc, Tp


# ----------------------------------------------------------------------------
# Pallas wrappers
# ----------------------------------------------------------------------------
def run_gru_layer(x_tm, w_ih_t, w_hh_t, b_comb, b_hn, lengths_col,
                  btile, t_chunk):
    """x_tm: (Tp, Bp, Din) bf16 time-major -> (Tp, Bp, Hp) bf16."""
    Tp, Bp, Din = x_tm.shape
    Hp = w_hh_t.shape[0]
    nb = Bp // btile
    nt = Tp // t_chunk

    vmem_est = _gru_vmem_bytes(t_chunk, btile, Din, Hp)
    vmem_limit = int(min(max(1.5 * vmem_est + (4 << 20), 16 << 20), 56 << 20))

    return pl.pallas_call(
        gru_layer_kernel,
        out_shape=jax.ShapeDtypeStruct((Tp, Bp, Hp), jnp.bfloat16),
        grid_spec=pltpu.PrefetchScalarGridSpec(
            num_scalar_prefetch=0,
            grid=(nb, nt),
            in_specs=[
                pl.BlockSpec((t_chunk, btile, Din), lambda i, t: (t, i, 0)),
                pl.BlockSpec((Din, 3 * Hp), lambda i, t: (0, 0),
                             pipeline_mode=pl.Buffered(1)),
                pl.BlockSpec((Hp, 3 * Hp), lambda i, t: (0, 0),
                             pipeline_mode=pl.Buffered(1)),
                pl.BlockSpec((1, 3 * Hp), lambda i, t: (0, 0),
                             pipeline_mode=pl.Buffered(1)),
                pl.BlockSpec((1, Hp), lambda i, t: (0, 0),
                             pipeline_mode=pl.Buffered(1)),
                pl.BlockSpec((btile, 1), lambda i, t: (i, 0)),
            ],
            out_specs=pl.BlockSpec((t_chunk, btile, Hp),
                                   lambda i, t: (t, i, 0)),
            scratch_shapes=[
                pltpu.VMEM((t_chunk, btile, 3 * Hp), jnp.float32),
                pltpu.VMEM((btile, Hp), jnp.float32),
            ],
        ),
        compiler_params=pltpu.CompilerParams(
            dimension_semantics=("parallel", "arbitrary"),
            vmem_limit_bytes=vmem_limit),
    )(x_tm, w_ih_t, w_hh_t, b_comb, b_hn, lengths_col)


def run_projection(x_flat_bf16, w_t_bf16, b, tm, tn):
    """x_flat: (Mp, Hp) bf16 -> (Mp, Npad) f32, tiled over (M, N).
    Activation block stays resident across the N axis."""
    Mp, Hp = x_flat_bf16.shape
    Npad = w_t_bf16.shape[1]
    cost = pl.CostEstimate(
        flops=2 * Mp * Hp * Npad,
        transcendentals=0,
        bytes_accessed=(Mp * Hp * 2 + Hp * Npad * 2 * (Mp // tm)
                        + Npad * 4 + Mp * Npad * 4),
    )
    return pl.pallas_call(
        proj_kernel,
        out_shape=jax.ShapeDtypeStruct((Mp, Npad), jnp.float32),
        grid_spec=pltpu.PrefetchScalarGridSpec(
            num_scalar_prefetch=0,
            grid=(Mp // tm, Npad // tn),
            in_specs=[
                pl.BlockSpec((tm, Hp), lambda i, j: (i, 0)),   # resident over N
                pl.BlockSpec((Hp, tn), lambda i, j: (0, j)),   # streamed weight
                pl.BlockSpec((1, tn), lambda i, j: (0, j)),
            ],
            out_specs=pl.BlockSpec((tm, tn), lambda i, j: (i, j)),
        ),
        compiler_params=pltpu.CompilerParams(
            dimension_semantics=("parallel", "parallel")),
        cost_estimate=cost,
    )(x_flat_bf16, w_t_bf16, b)


# ----------------------------------------------------------------------------
# Forward pass
# ----------------------------------------------------------------------------
def gru4rec_forward(params, item_ids, lengths, user_ids):
    """Embedding gathers / pad stay in plain JAX (glue); the GRU recurrence and
    the projection matmul run in Pallas kernels."""
    B, T = item_ids.shape
    Hp = params["Hp"]
    num_items = params["num_items"]

    # Embedding lookups, built directly time-major (no explicit transpose pass).
    item_emb = params["item_emb"][item_ids.T]                 # (T, B, Ei)
    user_emb = params["user_emb"][user_ids]                   # (B, Eu)
    user_emb = jnp.broadcast_to(user_emb[None, :, :],
                                (T, B, user_emb.shape[-1]))
    emb = jnp.concatenate([item_emb, user_emb], axis=-1)      # (T, B, E) f32
    E = emb.shape[-1]

    btile, Bp, t_chunk, Tp = _choose_gru_tiling(T, B, max(E, Hp), Hp)

    # Pad time/batch; padded rows have length 0 and padded timesteps are masked.
    x = jnp.pad(emb, ((0, Tp - T), (0, Bp - B), (0, 0))).astype(jnp.bfloat16)
    lengths_i = jnp.asarray(lengths, jnp.int32)
    lengths_col = jnp.pad(lengths_i, (0, Bp - B)).reshape(Bp, 1)

    # Stacked GRU layers (bf16 activations between layers).
    for layer in params["gru_layers"]:
        x = run_gru_layer(x, layer["w_ih_t"], layer["w_hh_t"],
                          layer["b_comb"], layer["b_hn"], lengths_col,
                          btile, t_chunk)

    # pad_packed_sequence pads to max(lengths).
    # TODO(synk): requires concrete lengths; under jax.jit this forces a host sync.
    max_len = int(np.max(np.asarray(lengths)))
    h = jnp.transpose(x[:max_len, :B], (1, 0, 2))             # (B, max_len, Hp) bf16

    # Tiled projection (activations already bf16; no in-kernel cast).
    M = B * max_len
    h_flat = h.reshape(M, Hp)
    Npad = params["proj_w_t"].shape[1]
    tn = min(512, Npad)
    if M >= 512:
        tm = 512
        Mp = _round_up(M, tm)
    else:
        Mp = _round_up(M, 8)
        tm = Mp
    h_flat = jnp.pad(h_flat, ((0, Mp - M), (0, 0)))
    logits = run_projection(h_flat, params["proj_w_t"], params["proj_b"],
                            tm, tn)
    return logits[:M, :num_items].reshape(B, max_len, num_items)


# ----------------------------------------------------------------------------
# Parameters: raw (PyTorch-like) init + kernel-ready preparation
# ----------------------------------------------------------------------------
def init_params(key, num_items, num_users, item_emb_size, user_emb_size,
                hidden_size, num_layers):
    keys = jax.random.split(key, 3 + 4 * num_layers)
    it = iter(keys)
    raw = {}
    raw["item_emb"] = jax.random.uniform(
        next(it), (num_items, item_emb_size), jnp.float32, -0.1, 0.1)
    raw["user_emb"] = jax.random.uniform(
        next(it), (num_users, user_emb_size), jnp.float32, -0.1, 0.1)

    k = 1.0 / np.sqrt(hidden_size)  # PyTorch default GRU init range
    layers = []
    in_size = item_emb_size + user_emb_size
    for l in range(num_layers):
        din = in_size if l == 0 else hidden_size
        layers.append({
            "w_ih": jax.random.uniform(next(it), (3 * hidden_size, din),
                                       jnp.float32, -k, k),
            "w_hh": jax.random.uniform(next(it), (3 * hidden_size, hidden_size),
                                       jnp.float32, -k, k),
            "b_ih": jax.random.uniform(next(it), (3 * hidden_size,),
                                       jnp.float32, -k, k),
            "b_hh": jax.random.uniform(next(it), (3 * hidden_size,),
                                       jnp.float32, -k, k),
        })
    raw["gru_layers"] = layers
    raw["proj_w"] = jax.random.uniform(next(it), (num_items, hidden_size),
                                       jnp.float32, -0.1, 0.1)
    raw["proj_b"] = jnp.zeros((num_items,), jnp.float32)
    raw["hidden_size"] = hidden_size
    return raw


def _pad_gate_cols(w_t, H, Hp):
    """(Din, 3H) -> (Din, 3Hp) with each gate in its own lane-aligned slab."""
    out = jnp.zeros((w_t.shape[0], 3 * Hp), w_t.dtype)
    for g in range(3):
        out = out.at[:, g * Hp:g * Hp + H].set(w_t[:, g * H:(g + 1) * H])
    return out


def _pad_gate_vec(b, H, Hp):
    out = jnp.zeros((3 * Hp,), b.dtype)
    for g in range(3):
        out = out.at[g * Hp:g * Hp + H].set(b[g * H:(g + 1) * H])
    return out


def prepare_params(raw):
    """Pad/transpose/cast raw weights into the kernel layout (bf16 MXU
    operands, lane-aligned Hp gate slabs, folded r/z biases)."""
    H = raw["hidden_size"]
    Hp = _round_up(H, LANE)
    num_items = raw["proj_w"].shape[0]
    prm = {"item_emb": raw["item_emb"], "user_emb": raw["user_emb"],
           "H": H, "Hp": Hp, "num_items": num_items}

    layers = []
    for li, lyr in enumerate(raw["gru_layers"]):
        w_ih_p = _pad_gate_cols(lyr["w_ih"].T, H, Hp)        # (Din, 3Hp)
        w_hh_p = _pad_gate_cols(lyr["w_hh"].T, H, Hp)        # (H,   3Hp)
        w_hh_p = jnp.zeros((Hp, 3 * Hp), jnp.float32).at[:H].set(w_hh_p)
        if li > 0:  # hidden-sized input: pad contraction rows too
            w_ih_p = jnp.zeros((Hp, 3 * Hp), jnp.float32).at[:H].set(w_ih_p)
        b_ih_p = _pad_gate_vec(lyr["b_ih"], H, Hp)
        b_hh_p = _pad_gate_vec(lyr["b_hh"], H, Hp)
        b_comb = b_ih_p.at[:2 * Hp].add(b_hh_p[:2 * Hp])     # fold r/z hidden bias
        layers.append({
            "w_ih_t": w_ih_p.astype(jnp.bfloat16),
            "w_hh_t": w_hh_p.astype(jnp.bfloat16),
            "b_comb": b_comb.reshape(1, 3 * Hp),
            "b_hn": b_hh_p[2 * Hp:3 * Hp].reshape(1, Hp),
        })
    prm["gru_layers"] = layers

    # Projection weight: pad rows to Hp, cols to a lane-dense tile multiple.
    Npad = _round_up(num_items, 512) if num_items >= 512 \
        else _round_up(num_items, LANE)
    w = jnp.zeros((Hp, Npad), jnp.float32).at[:H, :num_items].set(
        raw["proj_w"].T)
    prm["proj_w_t"] = w.astype(jnp.bfloat16)
    prm["proj_b"] = jnp.zeros((1, Npad), jnp.float32).at[0, :num_items].set(
        raw["proj_b"])
    return prm


# ----------------------------------------------------------------------------
# Pure-JAX reference (same bf16 operand casts, f32 accumulation/elementwise)
# ----------------------------------------------------------------------------
def reference_forward(raw, item_ids, lengths, user_ids):
    bf16 = jnp.bfloat16
    B, T = item_ids.shape
    item_emb = raw["item_emb"][item_ids]
    user_emb = jnp.broadcast_to(raw["user_emb"][user_ids][:, None, :],
                                (B, T, raw["user_emb"].shape[-1]))
    x = jnp.concatenate([item_emb, user_emb], axis=-1)

    lengths = jnp.asarray(lengths, jnp.int32)
    for layer in raw["gru_layers"]:
        H = layer["w_hh"].shape[1]
        w_ih_t = layer["w_ih"].T.astype(bf16)
        w_hh_t = layer["w_hh"].T.astype(bf16)
        b_ih, b_hh = layer["b_ih"], layer["b_hh"]
        h = jnp.zeros((B, H), jnp.float32)
        outs = []
        for t in range(T):
            gi = jnp.dot(x[:, t, :].astype(bf16), w_ih_t,
                         preferred_element_type=jnp.float32) + b_ih
            gh = jnp.dot(h.astype(bf16), w_hh_t,
                         preferred_element_type=jnp.float32) + b_hh
            r = jax.nn.sigmoid(gi[:, :H] + gh[:, :H])
            z = jax.nn.sigmoid(gi[:, H:2 * H] + gh[:, H:2 * H])
            n = jnp.tanh(gi[:, 2 * H:] + r * gh[:, 2 * H:])
            h_new = (1.0 - z) * n + z * h
            mask = (lengths > t)[:, None]
            h = jnp.where(mask, h_new, h)
            outs.append(jnp.where(mask, h_new, 0.0))
        x = jnp.stack(outs, axis=1)

    max_len = int(np.max(np.asarray(lengths)))
    x = x[:, :max_len, :]
    H = x.shape[-1]
    logits = jnp.dot(x.astype(bf16).reshape(B * max_len, H),
                     raw["proj_w"].T.astype(bf16),
                     preferred_element_type=jnp.float32) + raw["proj_b"][None, :]
    return logits.reshape(B, max_len, -1)


# ----------------------------------------------------------------------------
if __name__ == "__main__":
    # Small, deterministic configuration.
    num_items, num_users = 256, 32
    item_emb_size, user_emb_size = 16, 16
    hidden_size, num_layers = 32, 2
    dropout = 0.0  # TODO(synk): dropout only affects training; eval semantics used.
    B, T = 4, 8

    key = jax.random.PRNGKey(0)
    kp, k1, k2 = jax.random.split(key, 3)
    raw = init_params(kp, num_items, num_users, item_emb_size, user_emb_size,
                      hidden_size, num_layers)
    params = prepare_params(raw)

    item_ids = jax.random.randint(k1, (B, T), 0, num_items, dtype=jnp.int32)
    user_ids = jax.random.randint(k2, (B,), 0, num_users, dtype=jnp.int32)
    lengths = jnp.array([8, 5, 3, 8], dtype=jnp.int32)  # max == T

    out = gru4rec_forward(params, item_ids, lengths, user_ids)
    out = jax.block_until_ready(out)

    ref = reference_forward(raw, item_ids, lengths, user_ids)
    np.testing.assert_allclose(np.asarray(out), np.asarray(ref),
                               rtol=2e-2, atol=2e-2)

    print("KERNEL_OK")
</pallas_src>

<mosaic_0001>
module attributes {stable_mosaic.version = 11 : i64} {
  func.func @gru_layer_kernel(%arg0: i32, %arg1: i32, %arg2: memref<8x8x32xbf16, #tpu.memory_space<vmem>>, %arg3: memref<32x384xbf16, #tpu.memory_space<vmem>>, %arg4: memref<128x384xbf16, #tpu.memory_space<vmem>>, %arg5: memref<1x384xf32, #tpu.memory_space<vmem>>, %arg6: memref<1x128xf32, #tpu.memory_space<vmem>>, %arg7: memref<8x1xi32, #tpu.memory_space<vmem>>, %arg8: memref<8x8x128xbf16, #tpu.memory_space<vmem>>, %arg9: memref<8x8x384xf32, #tpu.memory_space<vmem>>, %arg10: memref<8x128xf32, #tpu.memory_space<vmem>>) attributes {dimension_semantics = [#tpu.dimension_semantics<parallel>, #tpu.dimension_semantics<arbitrary>], iteration_bounds = array<i64: 1, 1>, scalar_prefetch = 0 : i64, scratch_operands = 2 : i64, tpu.core_type = #tpu.core_type<tc>, window_params = [{transform_indices = @transform_0, window_bounds = array<i64: 8, 8, 32>}, {pipeline_mode = #tpu.pipeline_mode<synchronous>, transform_indices = @transform_1, window_bounds = array<i64: 32, 384>}, {pipeline_mode = #tpu.pipeline_mode<synchronous>, transform_indices = @transform_2, window_bounds = array<i64: 128, 384>}, {pipeline_mode = #tpu.pipeline_mode<synchronous>, transform_indices = @transform_3, window_bounds = array<i64: 1, 384>}, {pipeline_mode = #tpu.pipeline_mode<synchronous>, transform_indices = @transform_4, window_bounds = array<i64: 1, 128>}, {transform_indices = @transform_5, window_bounds = array<i64: 8, 1>}, {transform_indices = @transform_6, window_bounds = array<i64: 8, 8, 128>}]} {
    %c0_i32 = arith.constant 0 : i32
    %0 = arith.cmpi eq, %arg1, %c0_i32 : i32
    %1 = arith.extui %0 : i1 to i32
    %c0_i32_0 = arith.constant 0 : i32
    %2 = arith.cmpi ne, %1, %c0_i32_0 : i32
    scf.if %2 {
      %cst_100 = arith.constant 0.000000e+00 : f32
      %361 = vector.broadcast %cst_100 : f32 to vector<8x128xf32>
      %c0_101 = arith.constant 0 : index
      %c0_102 = arith.constant 0 : index
      %362 = vector.load %arg10[%c0_101, %c0_102] : memref<8x128xf32, #tpu.memory_space<vmem>>, vector<8x128xf32>
      tpu.vector_store %arg10[%c0_101, %c0_102], %361 {strides = array<i32>} : memref<8x128xf32, #tpu.memory_space<vmem>>, vector<8x128xf32>,
    } else {
    }
    %c0 = arith.constant 0 : index
    %c0_1 = arith.constant 0 : index
    %c0_2 = arith.constant 0 : index
    %3 = vector.load %arg2[%c0, %c0_1, %c0_2] : memref<8x8x32xbf16, #tpu.memory_space<vmem>>, vector<8x8x32xbf16>
    %4 = vector.shape_cast %3 : vector<8x8x32xbf16> to vector<64x32xbf16>
    %c0_3 = arith.constant 0 : index
    %c0_4 = arith.constant 0 : index
    %5 = vector.load %arg3[%c0_3, %c0_4] : memref<32x384xbf16, #tpu.memory_space<vmem>>, vector<32x384xbf16>
    %cst = arith.constant dense<0.000000e+00> : vector<64x384xf32>
    %6 = tpu.matmul %4, %5, %cst {dimension_numbers = #tpu.dot_dimension_numbers<[1], [0], [0], [1], [0, 0, 1, 1], [], []>} : vector<64x32xbf16>, vector<32x384xbf16>, vector<64x384xf32> -> vector<64x384xf32>
    %c0_5 = arith.constant 0 : index
    %c0_6 = arith.constant 0 : index
    %7 = vector.load %arg5[%c0_5, %c0_6] : memref<1x384xf32, #tpu.memory_space<vmem>>, vector<1x384xf32>
    %8 = vector.broadcast %7 : vector<1x384xf32> to vector<64x384xf32>
    %9 = arith.addf %6, %8 : vector<64x384xf32>
    %10 = vector.shape_cast %9 : vector<64x384xf32> to vector<8x8x384xf32>
    %c0_7 = arith.constant 0 : index
    %c0_8 = arith.constant 0 : index
    %c0_9 = arith.constant 0 : index
    %11 = vector.load %arg9[%c0_7, %c0_8, %c0_9] : memref<8x8x384xf32, #tpu.memory_space<vmem>>, vector<8x8x384xf32>
    tpu.vector_store %arg9[%c0_7, %c0_8, %c0_9], %10 {strides = array<i32>} : memref<8x8x384xf32, #tpu.memory_space<vmem>>, vector<8x8x384xf32>,
    %c0_10 = arith.constant 0 : index
    %c0_11 = arith.constant 0 : index
    %12 = vector.load %arg6[%c0_10, %c0_11] : memref<1x128xf32, #tpu.memory_space<vmem>>, vector<1x128xf32>
    %c0_12 = arith.constant 0 : index
    %c0_13 = arith.constant 0 : index
    %13 = vector.load %arg7[%c0_12, %c0_13] : memref<8x1xi32, #tpu.memory_space<vmem>>, vector<8x1xi32>
    %c8_i32 = arith.constant 8 : i32
    %14 = arith.muli %arg1, %c8_i32 : i32
    %c0_14 = arith.constant 0 : index
    %c0_15 = arith.constant 0 : index
    %15 = vector.load %arg10[%c0_14, %c0_15] : memref<8x128xf32, #tpu.memory_space<vmem>>, vector<8x128xf32>
    %c0_i32_16 = arith.constant 0 : i32
    %16 = arith.index_cast %c0_i32_16 : i32 to index
    %c0_17 = arith.constant 0 : index
    %c0_18 = arith.constant 0 : index
    %17 = vector.load %arg9[%16, %c0_17, %c0_18] : memref<8x8x384xf32, #tpu.memory_space<vmem>>, vector<1x8x384xf32>
    %18 = vector.shape_cast %17 : vector<1x8x384xf32> to vector<8x384xf32>
    %19 = arith.truncf %15 : vector<8x128xf32> to vector<8x128xbf16>
    %c0_19 = arith.constant 0 : index
    %c0_20 = arith.constant 0 : index
    %20 = vector.load %arg4[%c0_19, %c0_20] : memref<128x384xbf16, #tpu.memory_space<vmem>>, vector<128x384xbf16>
    %cst_21 = arith.constant dense<0.000000e+00> : vector<8x384xf32>
    %21 = tpu.matmul %19, %20, %cst_21 {dimension_numbers = #tpu.dot_dimension_numbers<[1], [0], [0], [1], [0, 0, 1, 1], [], []>} : vector<8x128xbf16>, vector<128x384xbf16>, vector<8x384xf32> -> vector<8x384xf32>
    %22 = vector.extract_strided_slice %18 {offsets = [0, 0], sizes = [8, 256], strides = [1, 1]} : vector<8x384xf32> to vector<8x256xf32>
    %23 = vector.extract_strided_slice %21 {offsets = [0, 0], sizes = [8, 256], strides = [1, 1]} : vector<8x384xf32> to vector<8x256xf32>
    %24 = arith.addf %22, %23 : vector<8x256xf32>
    %25 = arith.negf %24 : vector<8x256xf32>
    %26 = math.exp %25 : vector<8x256xf32>
    %cst_22 = arith.constant 1.000000e+00 : f32
    %27 = vector.broadcast %cst_22 : f32 to vector<8x256xf32>
    %28 = arith.addf %27, %26 : vector<8x256xf32>
    %29 = arith.divf %27, %28 : vector<8x256xf32>
    %30 = vector.extract_strided_slice %29 {offsets = [0, 0], sizes = [8, 128], strides = [1, 1]} : vector<8x256xf32> to vector<8x128xf32>
    %31 = vector.extract_strided_slice %29 {offsets = [0, 128], sizes = [8, 128], strides = [1, 1]} : vector<8x256xf32> to vector<8x128xf32>
    %32 = vector.extract_strided_slice %18 {offsets = [0, 256], sizes = [8, 128], strides = [1, 1]} : vector<8x384xf32> to vector<8x128xf32>
    %33 = vector.extract_strided_slice %21 {offsets = [0, 256], sizes = [8, 128], strides = [1, 1]} : vector<8x384xf32> to vector<8x128xf32>
    %34 = vector.broadcast %12 : vector<1x128xf32> to vector<8x128xf32>
    %35 = arith.addf %33, %34 : vector<8x128xf32>
    %36 = arith.mulf %30, %35 : vector<8x128xf32>
    %37 = arith.addf %32, %36 : vector<8x128xf32>
    %38 = math.tanh %37 : vector<8x128xf32>
    %cst_23 = arith.constant 1.000000e+00 : f32
    %39 = vector.broadcast %cst_23 : f32 to vector<8x128xf32>
    %40 = arith.subf %39, %31 : vector<8x128xf32>
    %41 = arith.mulf %40, %38 : vector<8x128xf32>
    %42 = arith.mulf %31, %15 : vector<8x128xf32>
    %43 = arith.addf %41, %42 : vector<8x128xf32>
    %44 = arith.addi %14, %c0_i32_16 : i32
    %45 = vector.broadcast %44 : i32 to vector<8x1xi32>
    %46 = arith.cmpi sgt, %13, %45 : vector<8x1xi32>
    %cst_24 = arith.constant 0.000000e+00 : f32
    %47 = vector.shape_cast %46 : vector<8x1xi1> to vector<8x1xi1>
    %48 = vector.broadcast %47 : vector<8x1xi1> to vector<8x128xi1>
    %49 = vector.broadcast %cst_24 : f32 to vector<8x128xf32>
    %50 = arith.select %48, %43, %49 : vector<8x128xi1>, vector<8x128xf32>
    %51 = arith.truncf %50 : vector<8x128xf32> to vector<8x128xbf16>
    %52 = arith.index_cast %c0_i32_16 : i32 to index
    %c0_25 = arith.constant 0 : index
    %c0_26 = arith.constant 0 : index
    %53 = vector.load %arg8[%52, %c0_25, %c0_26] : memref<8x8x128xbf16, #tpu.memory_space<vmem>>, vector<1x8x128xbf16>
    %54 = vector.shape_cast %53 : vector<1x8x128xbf16> to vector<8x128xbf16>
    %55 = vector.shape_cast %51 : vector<8x128xbf16> to vector<1x8x128xbf16>
    tpu.vector_store %arg8[%52, %c0_25, %c0_26], %55 {strides = array<i32>} : memref<8x8x128xbf16, #tpu.memory_space<vmem>>, vector<1x8x128xbf16>,
    %56 = vector.shape_cast %46 : vector<8x1xi1> to vector<8x1xi1>
    %57 = vector.broadcast %56 : vector<8x1xi1> to vector<8x128xi1>
    %58 = arith.select %57, %43, %15 : vector<8x128xi1>, vector<8x128xf32>
    %c1_i32 = arith.constant 1 : i32
    %59 = arith.index_cast %c1_i32 : i32 to index
    %c0_27 = arith.constant 0 : index
    %c0_28 = arith.constant 0 : index
    %60 = vector.load %arg9[%59, %c0_27, %c0_28] : memref<8x8x384xf32, #tpu.memory_space<vmem>>, vector<1x8x384xf32>
    %61 = vector.shape_cast %60 : vector<1x8x384xf32> to vector<8x384xf32>
    %62 = arith.truncf %58 : vector<8x128xf32> to vector<8x128xbf16>
    %c0_29 = arith.constant 0 : index
    %c0_30 = arith.constant 0 : index
    %63 = vector.load %arg4[%c0_29, %c0_30] : memref<128x384xbf16, #tpu.memory_space<vmem>>, vector<128x384xbf16>
    %cst_31 = arith.constant dense<0.000000e+00> : vector<8x384xf32>
    %64 = tpu.matmul %62, %63, %cst_31 {dimension_numbers = #tpu.dot_dimension_numbers<[1], [0], [0], [1], [0, 0, 1, 1], [], []>} : vector<8x128xbf16>, vector<128x384xbf16>, vector<8x384xf32> -> vector<8x384xf32>
    %65 = vector.extract_strided_slice %61 {offsets = [0, 0], sizes = [8, 256], strides = [1, 1]} : vector<8x384xf32> to vector<8x256xf32>
    %66 = vector.extract_strided_slice %64 {offsets = [0, 0], sizes = [8, 256], strides = [1, 1]} : vector<8x384xf32> to vector<8x256xf32>
    %67 = arith.addf %65, %66 : vector<8x256xf32>
    %68 = arith.negf %67 : vector<8x256xf32>
    %69 = math.exp %68 : vector<8x256xf32>
    %cst_32 = arith.constant 1.000000e+00 : f32
    %70 = vector.broadcast %cst_32 : f32 to vector<8x256xf32>
    %71 = arith.addf %70, %69 : vector<8x256xf32>
    %72 = arith.divf %70, %71 : vector<8x256xf32>
    %73 = vector.extract_strided_slice %72 {offsets = [0, 0], sizes = [8, 128], strides = [1, 1]} : vector<8x256xf32> to vector<8x128xf32>
    %74 = vector.extract_strided_slice %72 {offsets = [0, 128], sizes = [8, 128], strides = [1, 1]} : vector<8x256xf32> to vector<8x128xf32>
    %75 = vector.extract_strided_slice %61 {offsets = [0, 256], sizes = [8, 128], strides = [1, 1]} : vector<8x384xf32> to vector<8x128xf32>
    %76 = vector.extract_strided_slice %64 {offsets = [0, 256], sizes = [8, 128], strides = [1, 1]} : vector<8x384xf32> to vector<8x128xf32>
    %77 = vector.broadcast %12 : vector<1x128xf32> to vector<8x128xf32>
    %78 = arith.addf %76, %77 : vector<8x128xf32>
    %79 = arith.mulf %73, %78 : vector<8x128xf32>
    %80 = arith.addf %75, %79 : vector<8x128xf32>
    %81 = math.tanh %80 : vector<8x128xf32>
    %cst_33 = arith.constant 1.000000e+00 : f32
    %82 = vector.broadcast %cst_33 : f32 to vector<8x128xf32>
    %83 = arith.subf %82, %74 : vector<8x128xf32>
    %84 = arith.mulf %83, %81 : vector<8x128xf32>
    %85 = arith.mulf %74, %58 : vector<8x128xf32>
    %86 = arith.addf %84, %85 : vector<8x128xf32>
    %87 = arith.addi %14, %c1_i32 : i32
    %88 = vector.broadcast %87 : i32 to vector<8x1xi32>
    %89 = arith.cmpi sgt, %13, %88 : vector<8x1xi32>
    %cst_34 = arith.constant 0.000000e+00 : f32
    %90 = vector.shape_cast %89 : vector<8x1xi1> to vector<8x1xi1>
    %91 = vector.broadcast %90 : vector<8x1xi1> to vector<8x128xi1>
    %92 = vector.broadcast %cst_34 : f32 to vector<8x128xf32>
    %93 = arith.select %91, %86, %92 : vector<8x128xi1>, vector<8x128xf32>
    %94 = arith.truncf %93 : vector<8x128xf32> to vector<8x128xbf16>
    %95 = arith.index_cast %c1_i32 : i32 to index
    %c0_35 = arith.constant 0 : index
    %c0_36 = arith.constant 0 : index
    %96 = vector.load %arg8[%95, %c0_35, %c0_36] : memref<8x8x128xbf16, #tpu.memory_space<vmem>>, vector<1x8x128xbf16>
    %97 = vector.shape_cast %96 : vector<1x8x128xbf16> to vector<8x128xbf16>
    %98 = vector.shape_cast %94 : vector<8x128xbf16> to vector<1x8x128xbf16>
    tpu.vector_store %arg8[%95, %c0_35, %c0_36], %98 {strides = array<i32>} : memref<8x8x128xbf16, #tpu.memory_space<vmem>>, vector<1x8x128xbf16>,
    %99 = vector.shape_cast %89 : vector<8x1xi1> to vector<8x1xi1>
    %100 = vector.broadcast %99 : vector<8x1xi1> to vector<8x128xi1>
    %101 = arith.select %100, %86, %58 : vector<8x128xi1>, vector<8x128xf32>
    %c2_i32 = arith.constant 2 : i32
    %102 = arith.index_cast %c2_i32 : i32 to index
    %c0_37 = arith.constant 0 : index
    %c0_38 = arith.constant 0 : index
    %103 = vector.load %arg9[%102, %c0_37, %c0_38] : memref<8x8x384xf32, #tpu.memory_space<vmem>>, vector<1x8x384xf32>
    %104 = vector.shape_cast %103 : vector<1x8x384xf32> to vector<8x384xf32>
    %105 = arith.truncf %101 : vector<8x128xf32> to vector<8x128xbf16>
    %c0_39 = arith.constant 0 : index
    %c0_40 = arith.constant 0 : index
    %106 = vector.load %arg4[%c0_39, %c0_40] : memref<128x384xbf16, #tpu.memory_space<vmem>>, vector<128x384xbf16>
    %cst_41 = arith.constant dense<0.000000e+00> : vector<8x384xf32>
    %107 = tpu.matmul %105, %106, %cst_41 {dimension_numbers = #tpu.dot_dimension_numbers<[1], [0], [0], [1], [0, 0, 1, 1], [], []>} : vector<8x128xbf16>, vector<128x384xbf16>, vector<8x384xf32> -> vector<8x384xf32>
    %108 = vector.extract_strided_slice %104 {offsets = [0, 0], sizes = [8, 256], strides = [1, 1]} : vector<8x384xf32> to vector<8x256xf32>
    %109 = vector.extract_strided_slice %107 {offsets = [0, 0], sizes = [8, 256], strides = [1, 1]} : vector<8x384xf32> to vector<8x256xf32>
    %110 = arith.addf %108, %109 : vector<8x256xf32>
    %111 = arith.negf %110 : vector<8x256xf32>
    %112 = math.exp %111 : vector<8x256xf32>
    %cst_42 = arith.constant 1.000000e+00 : f32
    %113 = vector.broadcast %cst_42 : f32 to vector<8x256xf32>
    %114 = arith.addf %113, %112 : vector<8x256xf32>
    %115 = arith.divf %113, %114 : vector<8x256xf32>
    %116 = vector.extract_strided_slice %115 {offsets = [0, 0], sizes = [8, 128], strides = [1, 1]} : vector<8x256xf32> to vector<8x128xf32>
    %117 = vector.extract_strided_slice %115 {offsets = [0, 128], sizes = [8, 128], strides = [1, 1]} : vector<8x256xf32> to vector<8x128xf32>
    %118 = vector.extract_strided_slice %104 {offsets = [0, 256], sizes = [8, 128], strides = [1, 1]} : vector<8x384xf32> to vector<8x128xf32>
    %119 = vector.extract_strided_slice %107 {offsets = [0, 256], sizes = [8, 128], strides = [1, 1]} : vector<8x384xf32> to vector<8x128xf32>
    %120 = vector.broadcast %12 : vector<1x128xf32> to vector<8x128xf32>
    %121 = arith.addf %119, %120 : vector<8x128xf32>
    %122 = arith.mulf %116, %121 : vector<8x128xf32>
    %123 = arith.addf %118, %122 : vector<8x128xf32>
    %124 = math.tanh %123 : vector<8x128xf32>
    %cst_43 = arith.constant 1.000000e+00 : f32
    %125 = vector.broadcast %cst_43 : f32 to vector<8x128xf32>
    %126 = arith.subf %125, %117 : vector<8x128xf32>
    %127 = arith.mulf %126, %124 : vector<8x128xf32>
    %128 = arith.mulf %117, %101 : vector<8x128xf32>
    %129 = arith.addf %127, %128 : vector<8x128xf32>
    %130 = arith.addi %14, %c2_i32 : i32
    %131 = vector.broadcast %130 : i32 to vector<8x1xi32>
    %132 = arith.cmpi sgt, %13, %131 : vector<8x1xi32>
    %cst_44 = arith.constant 0.000000e+00 : f32
    %133 = vector.shape_cast %132 : vector<8x1xi1> to vector<8x1xi1>
    %134 = vector.broadcast %133 : vector<8x1xi1> to vector<8x128xi1>
    %135 = vector.broadcast %cst_44 : f32 to vector<8x128xf32>
    %136 = arith.select %134, %129, %135 : vector<8x128xi1>, vector<8x128xf32>
    %137 = arith.truncf %136 : vector<8x128xf32> to vector<8x128xbf16>
    %138 = arith.index_cast %c2_i32 : i32 to index
    %c0_45 = arith.constant 0 : index
    %c0_46 = arith.constant 0 : index
    %139 = vector.load %arg8[%138, %c0_45, %c0_46] : memref<8x8x128xbf16, #tpu.memory_space<vmem>>, vector<1x8x128xbf16>
    %140 = vector.shape_cast %139 : vector<1x8x128xbf16> to vector<8x128xbf16>
    %141 = vector.shape_cast %137 : vector<8x128xbf16> to vector<1x8x128xbf16>
    tpu.vector_store %arg8[%138, %c0_45, %c0_46], %141 {strides = array<i32>} : memref<8x8x128xbf16, #tpu.memory_space<vmem>>, vector<1x8x128xbf16>,
    %142 = vector.shape_cast %132 : vector<8x1xi1> to vector<8x1xi1>
    %143 = vector.broadcast %142 : vector<8x1xi1> to vector<8x128xi1>
    %144 = arith.select %143, %129, %101 : vector<8x128xi1>, vector<8x128xf32>
    %c3_i32 = arith.constant 3 : i32
    %145 = arith.index_cast %c3_i32 : i32 to index
    %c0_47 = arith.constant 0 : index
    %c0_48 = arith.constant 0 : index
    %146 = vector.load %arg9[%145, %c0_47, %c0_48] : memref<8x8x384xf32, #tpu.memory_space<vmem>>, vector<1x8x384xf32>
    %147 = vector.shape_cast %146 : vector<1x8x384xf32> to vector<8x384xf32>
    %148 = arith.truncf %144 : vector<8x128xf32> to vector<8x128xbf16>
    %c0_49 = arith.constant 0 : index
    %c0_50 = arith.constant 0 : index
    %149 = vector.load %arg4[%c0_49, %c0_50] : memref<128x384xbf16, #tpu.memory_space<vmem>>, vector<128x384xbf16>
    %cst_51 = arith.constant dense<0.000000e+00> : vector<8x384xf32>
    %150 = tpu.matmul %148, %149, %cst_51 {dimension_numbers = #tpu.dot_dimension_numbers<[1], [0], [0], [1], [0, 0, 1, 1], [], []>} : vector<8x128xbf16>, vector<128x384xbf16>, vector<8x384xf32> -> vector<8x384xf32>
    %151 = vector.extract_strided_slice %147 {offsets = [0, 0], sizes = [8, 256], strides = [1, 1]} : vector<8x384xf32> to vector<8x256xf32>
    %152 = vector.extract_strided_slice %150 {offsets = [0, 0], sizes = [8, 256], strides = [1, 1]} : vector<8x384xf32> to vector<8x256xf32>
    %153 = arith.addf %151, %152 : vector<8x256xf32>
    %154 = arith.negf %153 : vector<8x256xf32>
    %155 = math.exp %154 : vector<8x256xf32>
    %cst_52 = arith.constant 1.000000e+00 : f32
    %156 = vector.broadcast %cst_52 : f32 to vector<8x256xf32>
    %157 = arith.addf %156, %155 : vector<8x256xf32>
    %158 = arith.divf %156, %157 : vector<8x256xf32>
    %159 = vector.extract_strided_slice %158 {offsets = [0, 0], sizes = [8, 128], strides = [1, 1]} : vector<8x256xf32> to vector<8x128xf32>
    %160 = vector.extract_strided_slice %158 {offsets = [0, 128], sizes = [8, 128], strides = [1, 1]} : vector<8x256xf32> to vector<8x128xf32>
    %161 = vector.extract_strided_slice %147 {offsets = [0, 256], sizes = [8, 128], strides = [1, 1]} : vector<8x384xf32> to vector<8x128xf32>
    %162 = vector.extract_strided_slice %150 {offsets = [0, 256], sizes = [8, 128], strides = [1, 1]} : vector<8x384xf32> to vector<8x128xf32>
    %163 = vector.broadcast %12 : vector<1x128xf32> to vector<8x128xf32>
    %164 = arith.addf %162, %163 : vector<8x128xf32>
    %165 = arith.mulf %159, %164 : vector<8x128xf32>
    %166 = arith.addf %161, %165 : vector<8x128xf32>
    %167 = math.tanh %166 : vector<8x128xf32>
    %cst_53 = arith.constant 1.000000e+00 : f32
    %168 = vector.broadcast %cst_53 : f32 to vector<8x128xf32>
    %169 = arith.subf %168, %160 : vector<8x128xf32>
    %170 = arith.mulf %169, %167 : vector<8x128xf32>
    %171 = arith.mulf %160, %144 : vector<8x128xf32>
    %172 = arith.addf %170, %171 : vector<8x128xf32>
    %173 = arith.addi %14, %c3_i32 : i32
    %174 = vector.broadcast %173 : i32 to vector<8x1xi32>
    %175 = arith.cmpi sgt, %13, %174 : vector<8x1xi32>
    %cst_54 = arith.constant 0.000000e+00 : f32
    %176 = vector.shape_cast %175 : vector<8x1xi1> to vector<8x1xi1>
    %177 = vector.broadcast %176 : vector<8x1xi1> to vector<8x128xi1>
    %178 = vector.broadcast %cst_54 : f32 to vector<8x128xf32>
    %179 = arith.select %177, %172, %178 : vector<8x128xi1>, vector<8x128xf32>
    %180 = arith.truncf %179 : vector<8x128xf32> to vector<8x128xbf16>
    %181 = arith.index_cast %c3_i32 : i32 to index
    %c0_55 = arith.constant 0 : index
    %c0_56 = arith.constant 0 : index
    %182 = vector.load %arg8[%181, %c0_55, %c0_56] : memref<8x8x128xbf16, #tpu.memory_space<vmem>>, vector<1x8x128xbf16>
    %183 = vector.shape_cast %182 : vector<1x8x128xbf16> to vector<8x128xbf16>
    %184 = vector.shape_cast %180 : vector<8x128xbf16> to vector<1x8x128xbf16>
    tpu.vector_store %arg8[%181, %c0_55, %c0_56], %184 {strides = array<i32>} : memref<8x8x128xbf16, #tpu.memory_space<vmem>>, vector<1x8x128xbf16>,
    %185 = vector.shape_cast %175 : vector<8x1xi1> to vector<8x1xi1>
    %186 = vector.broadcast %185 : vector<8x1xi1> to vector<8x128xi1>
    %187 = arith.select %186, %172, %144 : vector<8x128xi1>, vector<8x128xf32>
    %c4_i32 = arith.constant 4 : i32
    %188 = arith.index_cast %c4_i32 : i32 to index
    %c0_57 = arith.constant 0 : index
    %c0_58 = arith.constant 0 : index
    %189 = vector.load %arg9[%188, %c0_57, %c0_58] : memref<8x8x384xf32, #tpu.memory_space<vmem>>, vector<1x8x384xf32>
    %190 = vector.shape_cast %189 : vector<1x8x384xf32> to vector<8x384xf32>
    %191 = arith.truncf %187 : vector<8x128xf32> to vector<8x128xbf16>
    %c0_59 = arith.constant 0 : index
    %c0_60 = arith.constant 0 : index
    %192 = vector.load %arg4[%c0_59, %c0_60] : memref<128x384xbf16, #tpu.memory_space<vmem>>, vector<128x384xbf16>
    %cst_61 = arith.constant dense<0.000000e+00> : vector<8x384xf32>
    %193 = tpu.matmul %191, %192, %cst_61 {dimension_numbers = #tpu.dot_dimension_numbers<[1], [0], [0], [1], [0, 0, 1, 1], [], []>} : vector<8x128xbf16>, vector<128x384xbf16>, vector<8x384xf32> -> vector<8x384xf32>
    %194 = vector.extract_strided_slice %190 {offsets = [0, 0], sizes = [8, 256], strides = [1, 1]} : vector<8x384xf32> to vector<8x256xf32>
    %195 = vector.extract_strided_slice %193 {offsets = [0, 0], sizes = [8, 256], strides = [1, 1]} : vector<8x384xf32> to vector<8x256xf32>
    %196 = arith.addf %194, %195 : vector<8x256xf32>
    %197 = arith.negf %196 : vector<8x256xf32>
    %198 = math.exp %197 : vector<8x256xf32>
    %cst_62 = arith.constant 1.000000e+00 : f32
    %199 = vector.broadcast %cst_62 : f32 to vector<8x256xf32>
    %200 = arith.addf %199, %198 : vector<8x256xf32>
    %201 = arith.divf %199, %200 : vector<8x256xf32>
    %202 = vector.extract_strided_slice %201 {offsets = [0, 0], sizes = [8, 128], strides = [1, 1]} : vector<8x256xf32> to vector<8x128xf32>
    %203 = vector.extract_strided_slice %201 {offsets = [0, 128], sizes = [8, 128], strides = [1, 1]} : vector<8x256xf32> to vector<8x128xf32>
    %204 = vector.extract_strided_slice %190 {offsets = [0, 256], sizes = [8, 128], strides = [1, 1]} : vector<8x384xf32> to vector<8x128xf32>
    %205 = vector.extract_strided_slice %193 {offsets = [0, 256], sizes = [8, 128], strides = [1, 1]} : vector<8x384xf32> to vector<8x128xf32>
    %206 = vector.broadcast %12 : vector<1x128xf32> to vector<8x128xf32>
    %207 = arith.addf %205, %206 : vector<8x128xf32>
    %208 = arith.mulf %202, %207 : vector<8x128xf32>
    %209 = arith.addf %204, %208 : vector<8x128xf32>
    %210 = math.tanh %209 : vector<8x128xf32>
    %cst_63 = arith.constant 1.000000e+00 : f32
    %211 = vector.broadcast %cst_63 : f32 to vector<8x128xf32>
    %212 = arith.subf %211, %203 : vector<8x128xf32>
    %213 = arith.mulf %212, %210 : vector<8x128xf32>
    %214 = arith.mulf %203, %187 : vector<8x128xf32>
    %215 = arith.addf %213, %214 : vector<8x128xf32>
    %216 = arith.addi %14, %c4_i32 : i32
    %217 = vector.broadcast %216 : i32 to vector<8x1xi32>
    %218 = arith.cmpi sgt, %13, %217 : vector<8x1xi32>
    %cst_64 = arith.constant 0.000000e+00 : f32
    %219 = vector.shape_cast %218 : vector<8x1xi1> to vector<8x1xi1>
    %220 = vector.broadcast %219 : vector<8x1xi1> to vector<8x128xi1>
    %221 = vector.broadcast %cst_64 : f32 to vector<8x128xf32>
    %222 = arith.select %220, %215, %221 : vector<8x128xi1>, vector<8x128xf32>
    %223 = arith.truncf %222 : vector<8x128xf32> to vector<8x128xbf16>
    %224 = arith.index_cast %c4_i32 : i32 to index
    %c0_65 = arith.constant 0 : index
    %c0_66 = arith.constant 0 : index
    %225 = vector.load %arg8[%224, %c0_65, %c0_66] : memref<8x8x128xbf16, #tpu.memory_space<vmem>>, vector<1x8x128xbf16>
    %226 = vector.shape_cast %225 : vector<1x8x128xbf16> to vector<8x128xbf16>
    %227 = vector.shape_cast %223 : vector<8x128xbf16> to vector<1x8x128xbf16>
    tpu.vector_store %arg8[%224, %c0_65, %c0_66], %227 {strides = array<i32>} : memref<8x8x128xbf16, #tpu.memory_space<vmem>>, vector<1x8x128xbf16>,
    %228 = vector.shape_cast %218 : vector<8x1xi1> to vector<8x1xi1>
    %229 = vector.broadcast %228 : vector<8x1xi1> to vector<8x128xi1>
    %230 = arith.select %229, %215, %187 : vector<8x128xi1>, vector<8x128xf32>
    %c5_i32 = arith.constant 5 : i32
    %231 = arith.index_cast %c5_i32 : i32 to index
    %c0_67 = arith.constant 0 : index
    %c0_68 = arith.constant 0 : index
    %232 = vector.load %arg9[%231, %c0_67, %c0_68] : memref<8x8x384xf32, #tpu.memory_space<vmem>>, vector<1x8x384xf32>
    %233 = vector.shape_cast %232 : vector<1x8x384xf32> to vector<8x384xf32>
    %234 = arith.truncf %230 : vector<8x128xf32> to vector<8x128xbf16>
    %c0_69 = arith.constant 0 : index
    %c0_70 = arith.constant 0 : index
    %235 = vector.load %arg4[%c0_69, %c0_70] : memref<128x384xbf16, #tpu.memory_space<vmem>>, vector<128x384xbf16>
    %cst_71 = arith.constant dense<0.000000e+00> : vector<8x384xf32>
    %236 = tpu.matmul %234, %235, %cst_71 {dimension_numbers = #tpu.dot_dimension_numbers<[1], [0], [0], [1], [0, 0, 1, 1], [], []>} : vector<8x128xbf16>, vector<128x384xbf16>, vector<8x384xf32> -> vector<8x384xf32>
    %237 = vector.extract_strided_slice %233 {offsets = [0, 0], sizes = [8, 256], strides = [1, 1]} : vector<8x384xf32> to vector<8x256xf32>
    %238 = vector.extract_strided_slice %236 {offsets = [0, 0], sizes = [8, 256], strides = [1, 1]} : vector<8x384xf32> to vector<8x256xf32>
    %239 = arith.addf %237, %238 : vector<8x256xf32>
    %240 = arith.negf %239 : vector<8x256xf32>
    %241 = math.exp %240 : vector<8x256xf32>
    %cst_72 = arith.constant 1.000000e+00 : f32
    %242 = vector.broadcast %cst_72 : f32 to vector<8x256xf32>
    %243 = arith.addf %242, %241 : vector<8x256xf32>
    %244 = arith.divf %242, %243 : vector<8x256xf32>
    %245 = vector.extract_strided_slice %244 {offsets = [0, 0], sizes = [8, 128], strides = [1, 1]} : vector<8x256xf32> to vector<8x128xf32>
    %246 = vector.extract_strided_slice %244 {offsets = [0, 128], sizes = [8, 128], strides = [1, 1]} : vector<8x256xf32> to vector<8x128xf32>
    %247 = vector.extract_strided_slice %233 {offsets = [0, 256], sizes = [8, 128], strides = [1, 1]} : vector<8x384xf32> to vector<8x128xf32>
    %248 = vector.extract_strided_slice %236 {offsets = [0, 256], sizes = [8, 128], strides = [1, 1]} : vector<8x384xf32> to vector<8x128xf32>
    %249 = vector.broadcast %12 : vector<1x128xf32> to vector<8x128xf32>
    %250 = arith.addf %248, %249 : vector<8x128xf32>
    %251 = arith.mulf %245, %250 : vector<8x128xf32>
    %252 = arith.addf %247, %251 : vector<8x128xf32>
    %253 = math.tanh %252 : vector<8x128xf32>
    %cst_73 = arith.constant 1.000000e+00 : f32
    %254 = vector.broadcast %cst_73 : f32 to vector<8x128xf32>
    %255 = arith.subf %254, %246 : vector<8x128xf32>
    %256 = arith.mulf %255, %253 : vector<8x128xf32>
    %257 = arith.mulf %246, %230 : vector<8x128xf32>
    %258 = arith.addf %256, %257 : vector<8x128xf32>
    %259 = arith.addi %14, %c5_i32 : i32
    %260 = vector.broadcast %259 : i32 to vector<8x1xi32>
    %261 = arith.cmpi sgt, %13, %260 : vector<8x1xi32>
    %cst_74 = arith.constant 0.000000e+00 : f32
    %262 = vector.shape_cast %261 : vector<8x1xi1> to vector<8x1xi1>
    %263 = vector.broadcast %262 : vector<8x1xi1> to vector<8x128xi1>
    %264 = vector.broadcast %cst_74 : f32 to vector<8x128xf32>
    %265 = arith.select %263, %258, %264 : vector<8x128xi1>, vector<8x128xf32>
    %266 = arith.truncf %265 : vector<8x128xf32> to vector<8x128xbf16>
    %267 = arith.index_cast %c5_i32 : i32 to index
    %c0_75 = arith.constant 0 : index
    %c0_76 = arith.constant 0 : index
    %268 = vector.load %arg8[%267, %c0_75, %c0_76] : memref<8x8x128xbf16, #tpu.memory_space<vmem>>, vector<1x8x128xbf16>
    %269 = vector.shape_cast %268 : vector<1x8x128xbf16> to vector<8x128xbf16>
    %270 = vector.shape_cast %266 : vector<8x128xbf16> to vector<1x8x128xbf16>
    tpu.vector_store %arg8[%267, %c0_75, %c0_76], %270 {strides = array<i32>} : memref<8x8x128xbf16, #tpu.memory_space<vmem>>, vector<1x8x128xbf16>,
    %271 = vector.shape_cast %261 : vector<8x1xi1> to vector<8x1xi1>
    %272 = vector.broadcast %271 : vector<8x1xi1> to vector<8x128xi1>
    %273 = arith.select %272, %258, %230 : vector<8x128xi1>, vector<8x128xf32>
    %c6_i32 = arith.constant 6 : i32
    %274 = arith.index_cast %c6_i32 : i32 to index
    %c0_77 = arith.constant 0 : index
    %c0_78 = arith.constant 0 : index
    %275 = vector.load %arg9[%274, %c0_77, %c0_78] : memref<8x8x384xf32, #tpu.memory_space<vmem>>, vector<1x8x384xf32>
    %276 = vector.shape_cast %275 : vector<1x8x384xf32> to vector<8x384xf32>
    %277 = arith.truncf %273 : vector<8x128xf32> to vector<8x128xbf16>
    %c0_79 = arith.constant 0 : index
    %c0_80 = arith.constant 0 : index
    %278 = vector.load %arg4[%c0_79, %c0_80] : memref<128x384xbf16, #tpu.memory_space<vmem>>, vector<128x384xbf16>
    %cst_81 = arith.constant dense<0.000000e+00> : vector<8x384xf32>
    %279 = tpu.matmul %277, %278, %cst_81 {dimension_numbers = #tpu.dot_dimension_numbers<[1], [0], [0], [1], [0, 0, 1, 1], [], []>} : vector<8x128xbf16>, vector<128x384xbf16>, vector<8x384xf32> -> vector<8x384xf32>
    %280 = vector.extract_strided_slice %276 {offsets = [0, 0], sizes = [8, 256], strides = [1, 1]} : vector<8x384xf32> to vector<8x256xf32>
    %281 = vector.extract_strided_slice %279 {offsets = [0, 0], sizes = [8, 256], strides = [1, 1]} : vector<8x384xf32> to vector<8x256xf32>
    %282 = arith.addf %280, %281 : vector<8x256xf32>
    %283 = arith.negf %282 : vector<8x256xf32>
    %284 = math.exp %283 : vector<8x256xf32>
    %cst_82 = arith.constant 1.000000e+00 : f32
    %285 = vector.broadcast %cst_82 : f32 to vector<8x256xf32>
    %286 = arith.addf %285, %284 : vector<8x256xf32>
    %287 = arith.divf %285, %286 : vector<8x256xf32>
    %288 = vector.extract_strided_slice %287 {offsets = [0, 0], sizes = [8, 128], strides = [1, 1]} : vector<8x256xf32> to vector<8x128xf32>
    %289 = vector.extract_strided_slice %287 {offsets = [0, 128], sizes = [8, 128], strides = [1, 1]} : vector<8x256xf32> to vector<8x128xf32>
    %290 = vector.extract_strided_slice %276 {offsets = [0, 256], sizes = [8, 128], strides = [1, 1]} : vector<8x384xf32> to vector<8x128xf32>
    %291 = vector.extract_strided_slice %279 {offsets = [0, 256], sizes = [8, 128], strides = [1, 1]} : vector<8x384xf32> to vector<8x128xf32>
    %292 = vector.broadcast %12 : vector<1x128xf32> to vector<8x128xf32>
    %293 = arith.addf %291, %292 : vector<8x128xf32>
    %294 = arith.mulf %288, %293 : vector<8x128xf32>
    %295 = arith.addf %290, %294 : vector<8x128xf32>
    %296 = math.tanh %295 : vector<8x128xf32>
    %cst_83 = arith.constant 1.000000e+00 : f32
    %297 = vector.broadcast %cst_83 : f32 to vector<8x128xf32>
    %298 = arith.subf %297, %289 : vector<8x128xf32>
    %299 = arith.mulf %298, %296 : vector<8x128xf32>
    %300 = arith.mulf %289, %273 : vector<8x128xf32>
    %301 = arith.addf %299, %300 : vector<8x128xf32>
    %302 = arith.addi %14, %c6_i32 : i32
    %303 = vector.broadcast %302 : i32 to vector<8x1xi32>
    %304 = arith.cmpi sgt, %13, %303 : vector<8x1xi32>
    %cst_84 = arith.constant 0.000000e+00 : f32
    %305 = vector.shape_cast %304 : vector<8x1xi1> to vector<8x1xi1>
    %306 = vector.broadcast %305 : vector<8x1xi1> to vector<8x128xi1>
    %307 = vector.broadcast %cst_84 : f32 to vector<8x128xf32>
    %308 = arith.select %306, %301, %307 : vector<8x128xi1>, vector<8x128xf32>
    %309 = arith.truncf %308 : vector<8x128xf32> to vector<8x128xbf16>
    %310 = arith.index_cast %c6_i32 : i32 to index
    %c0_85 = arith.constant 0 : index
    %c0_86 = arith.constant 0 : index
    %311 = vector.load %arg8[%310, %c0_85, %c0_86] : memref<8x8x128xbf16, #tpu.memory_space<vmem>>, vector<1x8x128xbf16>
    %312 = vector.shape_cast %311 : vector<1x8x128xbf16> to vector<8x128xbf16>
    %313 = vector.shape_cast %309 : vector<8x128xbf16> to vector<1x8x128xbf16>
    tpu.vector_store %arg8[%310, %c0_85, %c0_86], %313 {strides = array<i32>} : memref<8x8x128xbf16, #tpu.memory_space<vmem>>, vector<1x8x128xbf16>,
    %314 = vector.shape_cast %304 : vector<8x1xi1> to vector<8x1xi1>
    %315 = vector.broadcast %314 : vector<8x1xi1> to vector<8x128xi1>
    %316 = arith.select %315, %301, %273 : vector<8x128xi1>, vector<8x128xf32>
    %c7_i32 = arith.constant 7 : i32
    %317 = arith.index_cast %c7_i32 : i32 to index
    %c0_87 = arith.constant 0 : index
    %c0_88 = arith.constant 0 : index
    %318 = vector.load %arg9[%317, %c0_87, %c0_88] : memref<8x8x384xf32, #tpu.memory_space<vmem>>, vector<1x8x384xf32>
    %319 = vector.shape_cast %318 : vector<1x8x384xf32> to vector<8x384xf32>
    %320 = arith.truncf %316 : vector<8x128xf32> to vector<8x128xbf16>
    %c0_89 = arith.constant 0 : index
    %c0_90 = arith.constant 0 : index
    %321 = vector.load %arg4[%c0_89, %c0_90] : memref<128x384xbf16, #tpu.memory_space<vmem>>, vector<128x384xbf16>
    %cst_91 = arith.constant dense<0.000000e+00> : vector<8x384xf32>
    %322 = tpu.matmul %320, %321, %cst_91 {dimension_numbers = #tpu.dot_dimension_numbers<[1], [0], [0], [1], [0, 0, 1, 1], [], []>} : vector<8x128xbf16>, vector<128x384xbf16>, vector<8x384xf32> -> vector<8x384xf32>
    %323 = vector.extract_strided_slice %319 {offsets = [0, 0], sizes = [8, 256], strides = [1, 1]} : vector<8x384xf32> to vector<8x256xf32>
    %324 = vector.extract_strided_slice %322 {offsets = [0, 0], sizes = [8, 256], strides = [1, 1]} : vector<8x384xf32> to vector<8x256xf32>
    %325 = arith.addf %323, %324 : vector<8x256xf32>
    %326 = arith.negf %325 : vector<8x256xf32>
    %327 = math.exp %326 : vector<8x256xf32>
    %cst_92 = arith.constant 1.000000e+00 : f32
    %328 = vector.broadcast %cst_92 : f32 to vector<8x256xf32>
    %329 = arith.addf %328, %327 : vector<8x256xf32>
    %330 = arith.divf %328, %329 : vector<8x256xf32>
    %331 = vector.extract_strided_slice %330 {offsets = [0, 0], sizes = [8, 128], strides = [1, 1]} : vector<8x256xf32> to vector<8x128xf32>
    %332 = vector.extract_strided_slice %330 {offsets = [0, 128], sizes = [8, 128], strides = [1, 1]} : vector<8x256xf32> to vector<8x128xf32>
    %333 = vector.extract_strided_slice %319 {offsets = [0, 256], sizes = [8, 128], strides = [1, 1]} : vector<8x384xf32> to vector<8x128xf32>
    %334 = vector.extract_strided_slice %322 {offsets = [0, 256], sizes = [8, 128], strides = [1, 1]} : vector<8x384xf32> to vector<8x128xf32>
    %335 = vector.broadcast %12 : vector<1x128xf32> to vector<8x128xf32>
    %336 = arith.addf %334, %335 : vector<8x128xf32>
    %337 = arith.mulf %331, %336 : vector<8x128xf32>
    %338 = arith.addf %333, %337 : vector<8x128xf32>
    %339 = math.tanh %338 : vector<8x128xf32>
    %cst_93 = arith.constant 1.000000e+00 : f32
    %340 = vector.broadcast %cst_93 : f32 to vector<8x128xf32>
    %341 = arith.subf %340, %332 : vector<8x128xf32>
    %342 = arith.mulf %341, %339 : vector<8x128xf32>
    %343 = arith.mulf %332, %316 : vector<8x128xf32>
    %344 = arith.addf %342, %343 : vector<8x128xf32>
    %345 = arith.addi %14, %c7_i32 : i32
    %346 = vector.broadcast %345 : i32 to vector<8x1xi32>
    %347 = arith.cmpi sgt, %13, %346 : vector<8x1xi32>
    %cst_94 = arith.constant 0.000000e+00 : f32
    %348 = vector.shape_cast %347 : vector<8x1xi1> to vector<8x1xi1>
    %349 = vector.broadcast %348 : vector<8x1xi1> to vector<8x128xi1>
    %350 = vector.broadcast %cst_94 : f32 to vector<8x128xf32>
    %351 = arith.select %349, %344, %350 : vector<8x128xi1>, vector<8x128xf32>
    %352 = arith.truncf %351 : vector<8x128xf32> to vector<8x128xbf16>
    %353 = arith.index_cast %c7_i32 : i32 to index
    %c0_95 = arith.constant 0 : index
    %c0_96 = arith.constant 0 : index
    %354 = vector.load %arg8[%353, %c0_95, %c0_96] : memref<8x8x128xbf16, #tpu.memory_space<vmem>>, vector<1x8x128xbf16>
    %355 = vector.shape_cast %354 : vector<1x8x128xbf16> to vector<8x128xbf16>
    %356 = vector.shape_cast %352 : vector<8x128xbf16> to vector<1x8x128xbf16>
    tpu.vector_store %arg8[%353, %c0_95, %c0_96], %356 {strides = array<i32>} : memref<8x8x128xbf16, #tpu.memory_space<vmem>>, vector<1x8x128xbf16>,
    %357 = vector.shape_cast %347 : vector<8x1xi1> to vector<8x1xi1>
    %358 = vector.broadcast %357 : vector<8x1xi1> to vector<8x128xi1>
    %359 = arith.select %358, %344, %316 : vector<8x128xi1>, vector<8x128xf32>
    %c8_i32_97 = arith.constant 8 : i32
    %c0_98 = arith.constant 0 : index
    %c0_99 = arith.constant 0 : index
    %360 = vector.load %arg10[%c0_98, %c0_99] : memref<8x128xf32, #tpu.memory_space<vmem>>, vector<8x128xf32>
    tpu.vector_store %arg10[%c0_98, %c0_99], %359 {strides = array<i32>} : memref<8x128xf32, #tpu.memory_space<vmem>>, vector<8x128xf32>,
    return
  }
  func.func @transform_0(%arg0: i32, %arg1: i32) -> (i32, i32, i32) {
    %c0_i32 = arith.constant 0 : i32
    %c0_i32_0 = arith.constant 0 : i32
    return %arg1, %arg0, %c0_i32 : i32, i32, i32
  }
  func.func @transform_1(%arg0: i32, %arg1: i32) -> (i32, i32) {
    %c0_i32 = arith.constant 0 : i32
    %c0_i32_0 = arith.constant 0 : i32
    %c0_i32_1 = arith.constant 0 : i32
    return %c0_i32, %c0_i32_0 : i32, i32
  }
  func.func @transform_2(%arg0: i32, %arg1: i32) -> (i32, i32) {
    %c0_i32 = arith.constant 0 : i32
    %c0_i32_0 = arith.constant 0 : i32
    %c0_i32_1 = arith.constant 0 : i32
    return %c0_i32, %c0_i32_0 : i32, i32
  }
  func.func @transform_3(%arg0: i32, %arg1: i32) -> (i32, i32) {
    %c0_i32 = arith.constant 0 : i32
    %c0_i32_0 = arith.constant 0 : i32
    %c0_i32_1 = arith.constant 0 : i32
    return %c0_i32, %c0_i32_0 : i32, i32
  }
  func.func @transform_4(%arg0: i32, %arg1: i32) -> (i32, i32) {
    %c0_i32 = arith.constant 0 : i32
    %c0_i32_0 = arith.constant 0 : i32
    %c0_i32_1 = arith.constant 0 : i32
    return %c0_i32, %c0_i32_0 : i32, i32
  }
  func.func @transform_5(%arg0: i32, %arg1: i32) -> (i32, i32) {
    %c0_i32 = arith.constant 0 : i32
    %c0_i32_0 = arith.constant 0 : i32
    return %arg0, %c0_i32 : i32, i32
  }
  func.func @transform_6(%arg0: i32, %arg1: i32) -> (i32, i32, i32) {
    %c0_i32 = arith.constant 0 : i32
    %c0_i32_0 = arith.constant 0 : i32
    return %arg1, %arg0, %c0_i32 : i32, i32, i32
  }
}

</mosaic_0001>

<bundles_post_ra>
// kernel: tpu_custom_call.1
= control target key start
LH: loop header
LB: loop body
LE: loop exit
PB: predicated region body
PF: predicated region fallthrough
CT: control target
= control target key end

     0   :  { %11 = vsyncpa [#allocation5], 0  ;;  %s3949_s0 = inlined_call_operand.hbm [shape: bf16[8,8,32], index: 0, kind: input, shape index: {}]   ;;  %s3950_s1 = inlined_call_operand.hbm [shape: bf16[32,384], index: 1, kind: input, shape index: {}]   ;;  %s3951_s2 = inlined_call_operand.hbm [shape: bf16[128,384], index: 2, kind: input, shape index: {}]   ;;  %s3952_s3 = inlined_call_operand.vmem [shape: f32[1,384], index: 3, kind: input, shape index: {}]   ;;  %s3953_s4 = inlined_call_operand.vmem [shape: f32[1,128], index: 4, kind: input, shape index: {}]   ;;  %s3954_s5 = inlined_call_operand.vmem [shape: s32[8,1], index: 5, kind: input, shape index: {}]   ;;  %s3955_s6 = inlined_call_operand.hbm [shape: bf16[8,8,128], index: 6, kind: output, shape index: {}]  }
   0x1   :  { %12 = vsyncpa [#allocation8], 0 }
   0x2   :  { %13 = vsyncpa [#allocation6], 0  ;;  %s3401_s21 = smov [#allocation7]   ;;  %s3307_s25 = scalar_lea.hbm %s3950_s1, 768 }
   0x3   :  { %s31_s22 = sshll.u32 %s3401_s21, 4  ;;  %p3308_p0 = scmp.ne.s32.totalorder %s3950_s1, %s3307_s25  ;;  %s32_s22 = int_to_ptr.vmem [resolvable:$true] %s31_s22 }
   0x4   :  { %p3311_p1 = scmp.lt.u32.totalorder %s3307_s25, %s3950_s1 }
   0x6   :  { %p3313_p2 = pnand %p3311_p1, %p3308_p0 }
   0x8   :  { %3316 = shalt.err (!%p3313_p2)
}
   0x9   :  { %s3317_s30 = scalar_lea.vmem %s32_s22, 768  ;;  %p3322_p4 = scmp.lt.s32.totalorder %s32_s22, %s32_s22 }
   0xa   :  { %p3318_p3 = scmp.ne.s32.totalorder %s32_s22, %s3317_s30  ;;  %p3323_p5 = scmp.lt.s32.totalorder %s3317_s30, %s3317_s30 }
   0xc   :  { %p3324_p6 = por %p3323_p5, %p3322_p4 }
   0xe   :  { %p3325_p7 = pnand %p3324_p6, %p3318_p3 }
  0x10   :  { %3328 = shalt.err (!%p3325_p7)
}
  0x11   :  { %s3402_s7 = smov 192   ;;  %s3403_s8 = smov 12  }
  0x12   :  { %37 = dma.hbm_to_vmem [thread:$0]  %s3950_s1, 768, %s32_s22, [#allocation8], %s3402_s7, %s3402_s7, %s3403_s8  }
  0x13   :  { %s3404_s11 = smov [#allocation4]   ;;  %s3329_s15 = scalar_lea.hbm %s3949_s0, 512 }
  0x14   :  { %s19_s12 = sshll.u32 %s3404_s11, 4  ;;  %p3330_p8 = scmp.ne.s32.totalorder %s3949_s0, %s3329_s15  ;;  %s20_s12 = int_to_ptr.vmem [resolvable:$true] %s19_s12 }
  0x15   :  { %p3333_p9 = scmp.lt.u32.totalorder %s3329_s15, %s3949_s0 }
  0x17   :  { %p3335_p10 = pnand %p3333_p9, %p3330_p8 }
  0x19   :  { %3338 = shalt.err (!%p3335_p10)
}
  0x1a   :  { %s3339_s20 = scalar_lea.vmem %s20_s12, 512  ;;  %p3344_p12 = scmp.lt.s32.totalorder %s20_s12, %s20_s12 }
  0x1b   :  { %p3340_p11 = scmp.ne.s32.totalorder %s20_s12, %s3339_s20  ;;  %p3345_p13 = scmp.lt.s32.totalorder %s3339_s20, %s3339_s20 }
  0x1d   :  { %p3346_p0 = por %p3345_p13, %p3344_p12 }
  0x1f   :  { %p3347_p1 = pnand %p3346_p0, %p3340_p11 }
  0x21   :  { %3350 = shalt.err (!%p3347_p1)
}
  0x22   :  { %s3405_s1 = smov 64   ;;  %s3406_s21 = smov 4  }
  0x23   :  { %25 = dma.hbm_to_vmem [thread:$0]  %s3949_s0, 512, %s20_s12, [#allocation5], %s3405_s1, %s3405_s1, %s3406_s21  }
  0x24   :  { %s3407_s24 = smov [#allocation9]   ;;  %s3351_s28 = scalar_lea.hbm %s3951_s2, 3072 }
  0x25   :  { %s43_s25 = sshll.u32 %s3407_s24, 4  ;;  %p3352_p2 = scmp.ne.s32.totalorder %s3951_s2, %s3351_s28  ;;  %s44_s25 = int_to_ptr.vmem [resolvable:$true] %s43_s25 }
  0x26   :  { %p3355_p3 = scmp.lt.u32.totalorder %s3351_s28, %s3951_s2 }
  0x28   :  { %p3357_p4 = pnand %p3355_p3, %p3352_p2 }
  0x2a   :  { %3360 = shalt.err (!%p3357_p4)
}
  0x2b   :  { %s3361_s11 = scalar_lea.vmem %s44_s25, 3072  ;;  %p3366_p6 = scmp.lt.s32.totalorder %s44_s25, %s44_s25 }
  0x2c   :  { %p3362_p5 = scmp.ne.s32.totalorder %s44_s25, %s3361_s11  ;;  %p3367_p7 = scmp.lt.s32.totalorder %s3361_s11, %s3361_s11 }
  0x2e   :  { %p3368_p8 = por %p3367_p7, %p3366_p6 }
  0x30   :  { %p3369_p9 = pnand %p3368_p8, %p3362_p5 }
  0x32   :  { %3372 = shalt.err (!%p3369_p9)
}
  0x33   :  { %49 = dma.hbm_to_vmem [thread:$0]  %s3951_s2, 3072, %s44_s25, [#allocation8], %s3402_s7, %s3402_s7, %s3403_s8  }
  0x34   :  { %3395 = dma.done.wait [#allocation5], 512  }
  0x35   :  { %3396 = vsyncadd [#allocation5], 4294966784 }
  0x36   :  { %3397 = dma.done.wait [#allocation8], 3840  }
  0x37   :  { %3398 = vsyncadd [#allocation8], 4294963456  ;;  %v3408_v0 = vmov 0   ;;  %v3102_v1 = vld [vmem:[#allocation7 + $0x4] ss:$12 sps:$4 sm:$0xff]   ;;  %vm156_vm0 = vcmask 261120   ;;  %v89_v50 = vlaneseq }
  0x38   :  { %201 = vmatprep.mubr.bf16.mxu0 %v3408_v0  ;;  %3100 = vset.pattern.permute.xlu0 %v3408_v0  ;;  %v3104_v2 = vld [vmem:[#allocation7] ss:$12 sps:$4 sm:$0xff]   ;;  %v3105_v3 = vld [vmem:[#allocation7 + $0x1c] ss:$12 sps:$4 sm:$0xff]   ;;  %v3107_v4 = vld [vmem:[#allocation7 + $0x18] ss:$12 sps:$4 sm:$0xff]  }
  0x39   :  { %3101 = vset.pattern.permute.xlu1 %v3408_v0  ;;  %169 = vmatprep.subr.bf16.mxu0 %v3102_v1  ;;  %v3108_v5 = vld [vmem:[#allocation4] sm:$0xff]   ;;  %v3499_v7 = vld [vmem:[#allocation9] ss:$12 sps:$4 sm:$0xff]   ;;  %v3502_v8 = vld [vmem:[#allocation9 + $0x1c] ss:$12 sps:$4 sm:$0xff]   ;;  %v3409_v20 = vmov 0.0  }
  0x3a   :  { %170 = vmatpush1.bf16.msra.mxu0 %v3104_v2  ;;  %v3496_v6 = vld [vmem:[#allocation9 + $0x4] ss:$12 sps:$4 sm:$0xff]   ;;  %2920 = vmatprep.mubr.msk.bf16.mxu1 %vm156_vm0, %v3108_v5  ;;  %v3510_v11 = vld [vmem:[#allocation9 + $0x34] ss:$12 sps:$4 sm:$0xff]   ;;  %v3115_v12 = vld [vmem:[#allocation4 + $0x8] sm:$0xff]   ;;  %vm3410_vm5 = vmmov 0  }
  0x3b   :  { %171 = vmatprep.subr.bf16.mxu0 %v3105_v3  ;;  %v3505_v9 = vld [vmem:[#allocation9 + $0x18] ss:$12 sps:$4 sm:$0xff]   ;;  %v3127_v13 = vld [vmem:[#allocation7 + $0x20] ss:$12 sps:$4 sm:$0xff]   ;;  %v3518_v16 = vld [vmem:[#allocation9 + $0x48] ss:$12 sps:$4 sm:$0xff]  }
  0x3c   :  { %v3123_v10 = vld [vmem:[#allocation7 + $0x8] ss:$12 sps:$4 sm:$0xff]   ;;  %v3513_v14 = vld [vmem:[#allocation9 + $0x30] ss:$12 sps:$4 sm:$0xff]   ;;  %v3135_v17 = vld [vmem:[#allocation9 + $0x8] ss:$12 sps:$4 sm:$0xff]  }
  0x3d   :  { %2916 = vmatprep.subr.bf16.mxu1 %v3123_v10  ;;  %v3516_v15 = vld [vmem:[#allocation9 + $0x4c] ss:$12 sps:$4 sm:$0xff]   ;;  %v3122_v18 = vld [vmem:[#allocation4 + $0x10] sm:$0xff]   ;;  %v3534_v23 = vld [vmem:[#allocation9 + $0x7c] ss:$12 sps:$4 sm:$0xff]   ;;  %v3411_v40 = vmov 0.0|0.0  }
  0x3e   :  { %172 = vmatpush1.bf16.msra.mxu0 %v3107_v4  ;;  %2917 = vmatpush3.bf16.msra.mxu1 %v3123_v10  ;;  %v3524_v19 = vld [vmem:[#allocation9 + $0x64] ss:$12 sps:$4 sm:$0xff]   ;;  %v3139_v21 = vld [vmem:[#allocation9 + $0x20] ss:$12 sps:$4 sm:$0xff]   ;;  %v3142_v36 = vld [vmem:[#allocation9 + $0x68] ss:$12 sps:$4 sm:$0xff]  }
  0x3f   :  { %499 = vmatprep.subr.bf16.mxu0 %v3496_v6  ;;  %2918 = vmatprep.subr.bf16.mxu1 %v3127_v13  ;;  %v3530_v22 = vld [vmem:[#allocation9 + $0x60] ss:$12 sps:$4 sm:$0xff]   ;;  %v3536_v24 = vld [vmem:[#allocation9 + $0x78] ss:$12 sps:$4 sm:$0xff]   ;;  %v3546_v28 = vld [vmem:[%s3954_s5] sm:$0xff]  ;;  %v90_v51 = vshrl.u32 %v89_v50, 7 }
  0x40   :  { %v3140_v25 = vld [vmem:[#allocation9 + $0x38] ss:$12 sps:$4 sm:$0xff]   ;;  %v3131_v26 = vld [vmem:[#allocation4 + $0x18] sm:$0xff]   ;;  %v3541_v27 = vld [vmem:[#allocation9 + $0x94] ss:$12 sps:$4 sm:$0xff]   ;;  %vm609_vm1 = vcmp.gt.s32.totalorder %v3546_v28, 0 }
  0x41   :  { %2615 = vmatmul.mubr.msk.bf16.vlgmr.msra.gmra.mrb[0].mxu0 %vm156_vm0, %v3108_v5  ;;  %v3141_v29 = vld [vmem:[#allocation9 + $0x50] ss:$12 sps:$4 sm:$0xff]   ;;  %vm889_vm2 = vcmp.gt.s32.totalorder %v3546_v28, 1  ;;  %vm1732_vm3 = vcmp.gt.s32.totalorder %v3546_v28, 4  ;;  %vm2294_vm4 = vcmp.gt.s32.totalorder %v3546_v28, 6  ;;  %v610_v31 = vsel %vm609_vm1, 1, %v3408_v0 }
  0x42   :  { %500 = vmatpush1.bf16.msra.mxu0 %v3499_v7  ;;  %211 = vmatprep.mubr.bf16.mxu0 %v3408_v0  ;;  %v3554_v30 = vld [vmem:[#allocation9 + $0x90] ss:$12 sps:$4 sm:$0xff]   ;;  %v890_v32 = vsel %vm889_vm2, 1, %v3408_v0  ;;  %v1733_v33 = vsel %vm1732_vm3, 1, %v3408_v0  ;;  %v2295_v34 = vsel %vm2294_vm4, 1, %v3408_v0  ;;  %v91_v52 = vsub.s32 0, %v90_v51 }
  0x43   :  { %501 = vmatprep.subr.bf16.mxu0 %v3502_v8  ;;  %2919 = vmatpush3.bf16.msra.mxu1 %v3127_v13  ;;  %v3561_v35 = vld [vmem:[#allocation9 + $0xac] ss:$12 sps:$4 sm:$0xff]   ;;  %v3568_v37 = vld [vmem:[#allocation9 + $0xa8] ss:$12 sps:$4 sm:$0xff]   ;;  %v3145_v41 = vld [vmem:[#allocation9 + $0xb0] ss:$12 sps:$4 sm:$0xff]  }
  0x44   :  { %2928 = vmatprep.subr.bf16.mxu1 %v3409_v20  ;;  %612 = vperm.xlu0 %3100, %v610_v31   ;;  %v3143_v38 = vld [vmem:[#allocation9 + $0x80] ss:$12 sps:$4 sm:$0xff]   ;;  %v3144_v39 = vld [vmem:[#allocation9 + $0x98] ss:$12 sps:$4 sm:$0xff]   ;;  %v3146_v42 = vld [vmem:[#allocation9 + $0x8] ss:$12 sps:$4 sm:$0xff]  }
  0x45   :  { %v3147_v43 = vld [vmem:[#allocation9 + $0x20] ss:$12 sps:$4 sm:$0xff]   ;;  %v3148_v44 = vld [vmem:[#allocation9 + $0x38] ss:$12 sps:$4 sm:$0xff]   ;;  %v3149_v45 = vld [vmem:[#allocation9 + $0x50] ss:$12 sps:$4 sm:$0xff]  }
  0x46   :  { %502 = vmatpush1.bf16.msra.mxu0 %v3505_v9  ;;  %2921 = vmatmul.mubr.msk.bf16.vlgmr.msra.gmra.mrb[0].mxu1 %vm156_vm0, %v3115_v12  ;;  %v3150_v46 = vld [vmem:[#allocation9 + $0x68] ss:$12 sps:$4 sm:$0xff]   ;;  %v3151_v47 = vld [vmem:[#allocation9 + $0x80] ss:$12 sps:$4 sm:$0xff]   ;;  %v3152_v48 = vld [vmem:[#allocation9 + $0x98] ss:$12 sps:$4 sm:$0xff]  }
  0x47   :  { %503 = vmatprep.subr.bf16.mxu0 %v3510_v11  ;;  %2929 = vmatpush3.bf16.msra.mxu1 %v3135_v17  ;;  %v3153_v49 = vld [vmem:[#allocation9 + $0xb0] ss:$12 sps:$4 sm:$0xff]   ;;  %v95_v54 = vsub.s32 1, %v90_v51  ;;  %v99_v63 = vsub.s32 2, %v90_v51  ;;  %vm1170_vm8 = vcmp.gt.s32.totalorder %v3546_v28, 2  ;;  %vm1451_vm9 = vcmp.gt.s32.totalorder %v3546_v28, 3 }
  0x48   :  { %2924 = vmatprep.mubr.msk.bf16.mxu1 %vm156_vm0, %v3122_v18  ;;  %2930 = vmatprep.subr.bf16.mxu1 %v3409_v20  ;;  %v87_v53 = vld [vmem:[%s3952_s3] sm:$0x7]  ;;  %vm2013_vm10 = vcmp.gt.s32.totalorder %v3546_v28, 5  ;;  %vm2575_vm11 = vcmp.gt.s32.totalorder %v3546_v28, 7 }
  0x49   :  { %2616 = vmatmul.mubr.msk.bf16.gmra.mrb[4].mxu0 %vm156_vm0, %v3115_v12  ;;  %892 = vperm.xlu0 %3100, %v890_v32   ;;  %v92_v56 = vrot.slane %v87_v53, %v91_v52  ;;  %v96_v58 = vrot.slane %v87_v53, %v95_v54  ;;  %v3615_v2 = vrot.slane %v87_v53, %v99_v63 }
  0x4a   :  { %504 = vmatpush1.bf16.msra.mxu0 %v3513_v14  ;;  %221 = vmatprep.mubr.bf16.mxu0 %v3408_v0 }
  0x4b   :  { %505 = vmatprep.subr.bf16.mxu0 %v3516_v15  ;;  %2931 = vmatpush3.bf16.msra.mxu1 %v3139_v21 }
  0x4c   :  { %2932 = vmatprep.subr.bf16.mxu1 %v3409_v20 }
  0x4d   :  { %1735 = vperm.xlu0 %3100, %v1733_v33  }
  0x4e   :  { %506 = vmatpush1.bf16.msra.mxu0 %v3518_v16  ;;  %2925 = vmatmul.mubr.msk.bf16.gmra.mrb[4].mxu1 %vm156_vm0, %v3131_v26 }
  0x4f   :  { %507 = vmatprep.subr.bf16.mxu0 %v3524_v19  ;;  %2933 = vmatpush3.bf16.msra.mxu1 %v3140_v25 }
  0x50   :  { %2944 = vmatprep.mubr.msk.bf16.mxu1 %vm3410_vm5, %v3409_v20  ;;  %2934 = vmatprep.subr.bf16.mxu1 %v3409_v20 }
  0x51   :  { %2617 = vmatmul.mubr.msk.bf16.gmra.mrb[8].mxu0 %vm156_vm0, %v3122_v18  ;;  %2297 = vperm.xlu0 %3100, %v2295_v34  }
  0x52   :  { %508 = vmatpush1.bf16.msra.mxu0 %v3530_v22  ;;  %231 = vmatprep.mubr.bf16.mxu0 %v3408_v0 }
  0x53   :  { %509 = vmatprep.subr.bf16.mxu0 %v3534_v23  ;;  %2935 = vmatpush3.bf16.msra.mxu1 %v3141_v29 }
  0x54   :  { %2936 = vmatprep.subr.bf16.mxu1 %v3409_v20 }
  0x56   :  { %510 = vmatpush1.bf16.msra.mxu0 %v3536_v24 }
  0x57   :  { %511 = vmatprep.subr.bf16.mxu0 %v3541_v27  ;;  %2937 = vmatpush3.bf16.msra.mxu1 %v3142_v36 }
  0x58   :  { %2938 = vmatprep.subr.bf16.mxu1 %v3409_v20 }
  0x59   :  { %2618 = vmatmul.mubr.msk.bf16.gmra.mrb[12].mxu0 %vm156_vm0, %v3131_v26 }
  0x5a   :  { %512 = vmatpush1.bf16.msra.mxu0 %v3554_v30  ;;  %531 = vmatprep.mubr.bf16.mxu0 %v3408_v0 }
  0x5b   :  { %513 = vmatprep.subr.bf16.mxu0 %v3561_v35  ;;  %2939 = vmatpush3.bf16.msra.mxu1 %v3143_v38 }
  0x5c   :  { %2940 = vmatprep.subr.bf16.mxu1 %v3409_v20 }
  0x5e   :  { %514 = vmatpush1.bf16.msra.mxu0 %v3568_v37 }
  0x5f   :  { %784 = vmatprep.subr.bf16.mxu0 %v3496_v6  ;;  %2941 = vmatpush3.bf16.msra.mxu1 %v3144_v39 }
  0x60   :  { %2942 = vmatprep.subr.bf16.mxu1 %v3409_v20 }
  0x61   :  { %532 = vmatmul.mubr.bf16.vlgmr.msra.gmra.mrb[16].mxu0 %v3411_v40 }
  0x62   :  { %785 = vmatpush1.bf16.msra.mxu0 %v3499_v7  ;;  %816 = vmatprep.mubr.bf16.mxu0 %v3408_v0 }
  0x63   :  { %786 = vmatprep.subr.bf16.mxu0 %v3502_v8  ;;  %2943 = vmatpush3.bf16.msra.mxu1 %v3145_v41 }
  0x64   :  { %2948 = vmatprep.subr.bf16.mxu1 %v3409_v20 }
  0x66   :  { %787 = vmatpush1.bf16.msra.mxu0 %v3505_v9  ;;  %2945 = vmatmul.mubr.bf16.vlgmr.msra.gmra.mrb[8].mxu1 %v3411_v40 }
  0x67   :  { %788 = vmatprep.subr.bf16.mxu0 %v3510_v11  ;;  %2964 = vmatprep.mubr.msk.bf16.mxu1 %vm3410_vm5, %v3409_v20 }
  0x68   :  { %2949 = vmatpush3.bf16.msra.mxu1 %v3146_v42 }
  0x69   :  { %2950 = vmatprep.subr.bf16.mxu1 %v3409_v20 }
  0x6a   :  { %789 = vmatpush1.bf16.msra.mxu0 %v3513_v14 }
  0x6b   :  { %790 = vmatprep.subr.bf16.mxu0 %v3516_v15 }
  0x6c   :  { %2951 = vmatpush3.bf16.msra.mxu1 %v3147_v43 }
  0x6d   :  { %2952 = vmatprep.subr.bf16.mxu1 %v3409_v20 }
  0x6e   :  { %791 = vmatpush1.bf16.msra.mxu0 %v3518_v16 }
  0x6f   :  { %792 = vmatprep.subr.bf16.mxu0 %v3524_v19 }
  0x70   :  { %2953 = vmatpush3.bf16.msra.mxu1 %v3148_v44 }
  0x71   :  { %2954 = vmatprep.subr.bf16.mxu1 %v3409_v20 }
  0x72   :  { %793 = vmatpush1.bf16.msra.mxu0 %v3530_v22 }
  0x73   :  { %794 = vmatprep.subr.bf16.mxu0 %v3534_v23 }
  0x74   :  { %2955 = vmatpush3.bf16.msra.mxu1 %v3149_v45 }
  0x75   :  { %2956 = vmatprep.subr.bf16.mxu1 %v3409_v20 }
  0x76   :  { %795 = vmatpush1.bf16.msra.mxu0 %v3536_v24 }
  0x77   :  { %796 = vmatprep.subr.bf16.mxu0 %v3541_v27 }
  0x78   :  { %2957 = vmatpush3.bf16.msra.mxu1 %v3150_v46 }
  0x79   :  { %2958 = vmatprep.subr.bf16.mxu1 %v3409_v20 }
  0x7a   :  { %797 = vmatpush1.bf16.msra.mxu0 %v3554_v30 }
  0x7b   :  { %798 = vmatprep.subr.bf16.mxu0 %v3561_v35 }
  0x7c   :  { %2959 = vmatpush3.bf16.msra.mxu1 %v3151_v47 }
  0x7d   :  { %2960 = vmatprep.subr.bf16.mxu1 %v3409_v20 }
  0x7e   :  { %799 = vmatpush1.bf16.msra.mxu0 %v3568_v37 }
  0x7f   :  { %1065 = vmatprep.subr.bf16.mxu0 %v3496_v6 }
  0x80   :  { %2961 = vmatpush3.bf16.msra.mxu1 %v3152_v48 }
  0x81   :  { %2962 = vmatprep.subr.bf16.mxu1 %v3409_v20 }
  0x84   :  { %2963 = vmatpush3.bf16.msra.mxu1 %v3153_v49 }
  0x85   :  { %2968 = vmatprep.subr.bf16.mxu1 %v3409_v20 }
 0x114   :  { %v203_v55 = vpop.f32.mrb[0].mxu0 }
 0x115   :  { %v205_v57 = vpop.f32.mrb[1].mxu0 }
 0x116   :  { %v207_v59 = vpop.f32.mrb[2].mxu0 }
 0x117   :  { %v3611_v60 = vadd.f32 %v207_v59, %v92_v56  ;;  %v209_v61 = vpop.f32.mrb[3].mxu0 }
 0x118   :  { %v3613_v62 = vadd.f32 %v209_v61, %v96_v58 }
 0x119   :  { %v2922_v17 = vpop.f32.mrb[0].mxu1 }
 0x11a   :  { %v3626_v21 = vadd.f32 %v2922_v17, %v3615_v2  ;;  %v276_v25 = vpop.f32.mrb[1].mxu1 }
 0x11b   :  { %v2923_v26 = vpop.f32.mrb[2].mxu1 }
 0x11c   :  { %v213_v1 = vpop.f32.mrb[4].mxu0  ;;  %v3629_v29 = vadd.f32 %v2923_v26, %v3615_v2  ;;  %v279_v31 = vpop.f32.mrb[3].mxu1 }
 0x11d   :  { %v3617_v3 = vadd.f32 %v213_v1, %v92_v56  ;;  %v215_v4 = vpop.f32.mrb[5].mxu0  ;;  %v3632_v32 = vadd.f32 %v279_v31, %v3615_v2 }
 0x11e   :  { %v3619_v5 = vadd.f32 %v215_v4, %v96_v58  ;;  %v217_v10 = vpop.f32.mrb[6].mxu0  ;;  %v204_v4 = vadd.f32 %v203_v55, %v92_v56  ;;  %v3665_v55 = vld [vmem:[%s3953_s4] ss:$0 sm:$0xff] }
 0x11f   :  { %v3621_v12 = vadd.f32 %v217_v10, %v92_v56  ;;  %v219_v13 = vpop.f32.mrb[7].mxu0  ;;  %v206_v10 = vadd.f32 %v205_v57, %v96_v58 }
 0x120   :  { %v3623_v18 = vadd.f32 %v219_v13, %v96_v58 }
 0x121   :  { %v2926_v42 = vpop.f32.mrb[4].mxu1 }
 0x122   :  { %v3643_v44 = vadd.f32 %v2926_v42, %v3615_v2  ;;  %v292_v45 = vpop.f32.mrb[5].mxu1 }
 0x123   :  { %v3646_v46 = vadd.f32 %v292_v45, %v3615_v2  ;;  %v2927_v47 = vpop.f32.mrb[6].mxu1 }
 0x124   :  { %v223_v33 = vpop.f32.mrb[8].mxu0  ;;  %v3649_v48 = vadd.f32 %v2927_v47, %v3615_v2  ;;  %v295_v49 = vpop.f32.mrb[7].mxu1 }
 0x125   :  { %v3634_v34 = vadd.f32 %v223_v33, %v92_v56  ;;  %v225_v36 = vpop.f32.mrb[9].mxu0  ;;  %v3652_v50 = vadd.f32 %v295_v49, %v3615_v2 }
 0x126   :  { %v3636_v38 = vadd.f32 %v225_v36, %v96_v58  ;;  %v227_v39 = vpop.f32.mrb[10].mxu0 }
 0x127   :  { %v3638_v40 = vadd.f32 %v227_v39, %v92_v56  ;;  %v229_v41 = vpop.f32.mrb[11].mxu0 }
 0x128   :  { %v3640_v43 = vadd.f32 %v229_v41, %v96_v58 }
 0x12c   :  { %v233_v51 = vpop.f32.mrb[12].mxu0 }
 0x12d   :  { %v3654_v52 = vadd.f32 %v233_v51, %v92_v56  ;;  %v235_v53 = vpop.f32.mrb[13].mxu0 }
 0x12e   :  { %v3656_v54 = vadd.f32 %v235_v53, %v96_v58  ;;  %v237_v59 = vpop.f32.mrb[14].mxu0 }
 0x12f   :  { %v3658_v61 = vadd.f32 %v237_v59, %v92_v56  ;;  %v239_v63 = vpop.f32.mrb[15].mxu0 }
 0x130   :  { %v3660_v1 = vadd.f32 %v239_v63, %v96_v58  ;;  %v277_v63 = vadd.f32 %v276_v25, %v3615_v2  ;;  %v3154_v2 = vld [vmem:[#allocation9 + $0x8] ss:$12 sps:$4 sm:$0xff]   ;;  %v3155_v25 = vld [vmem:[#allocation9 + $0x20] ss:$12 sps:$4 sm:$0xff]  }
 0x134   :  { %v533_v13 = vpop.f32.mrb[16].mxu0 }
 0x135   :  { %v580_v17 = vadd.f32 %v533_v13, %v204_v4  ;;  %v535_v26 = vpop.f32.mrb[17].mxu0 }
 0x136   :  { %v581_v31 = vadd.f32 %v535_v26, %v206_v10  ;;  %v537_v33 = vpop.f32.mrb[18].mxu0 }
 0x137   :  { %v2647_v36 = vmul.f32 -1.442695, %v580_v17  ;;  %v538_v39 = vpop.f32.mrb[19].mxu0 }
 0x138   :  { %v2648_v41 = vmul.f32 -1.442695, %v581_v31  ;;  %v613_v31 = vpop.permute.xlu0 %612 }
 0x139   :  { %3226 = vpow2.f32 %v2647_v36  ;;  %v574_v42 = vpop.f32.mrb[8].mxu1  ;;  %vm614_vm6 = vcmp.eq.s32.totalorder %v613_v31, 1 }
 0x13a   :  { %3228 = vpow2.f32 %v2648_v41  ;;  %v2946_v45 = vpop.f32.mrb[9].mxu1  ;;  %v600_v57 = vadd.f32 %v3665_v55, %v574_v42  ;;  %vm2832_vm7 = vmpackc.low %vm614_vm6, %vm614_vm6 }
 0x13b   :  { %v577_v47 = vpop.f32.mrb[10].mxu1 }
 0x13c   :  { %v2947_v49 = vpop.f32.mrb[11].mxu1  ;;  %v3156_v47 = vld [vmem:[#allocation9 + $0x38] ss:$12 sps:$4 sm:$0xff]  }
 0x13d   :  { %v3157_v49 = vld [vmem:[#allocation9 + $0x50] ss:$12 sps:$4 sm:$0xff]  }
 0x143   :  { %v3227_v51 = vpop.eup %3226 }
 0x144   :  { %v588_v53 = vadd.f32 1.0, %v3227_v51  ;;  %v3229_v59 = vpop.eup %3228  ;;  %v3158_v51 = vld [vmem:[#allocation9 + $0x68] ss:$12 sps:$4 sm:$0xff]  }
 0x145   :  { %v589_v56 = vadd.f32 1.0, %v3229_v59  ;;  %v3161_v59 = vld [vmem:[#allocation9 + $0xb0] ss:$12 sps:$4 sm:$0xff]  }
 0x146   :  { %3230 = vrcp.f32 %v588_v53  ;;  %v3159_v53 = vld [vmem:[#allocation9 + $0x80] ss:$12 sps:$4 sm:$0xff]  }
 0x147   :  { %3232 = vrcp.f32 %v589_v56  ;;  %v1171_v56 = vsel %vm1170_vm8, 1, %v3408_v0 }
 0x148   :  { %1173 = vperm.xlu1 %3101, %v1171_v56  }
 0x150   :  { %v3231_v58 = vpop.eup %3230 }
 0x151   :  { %v601_v4 = vmul.f32 %v3231_v58, %v600_v57  ;;  %v3233_v13 = vpop.eup %3232  ;;  %v1452_v57 = vsel %vm1451_vm9, 1, %v3408_v0  ;;  %v2014_v58 = vsel %vm2013_vm10, 1, %v3408_v0 }
 0x152   :  { %v604_v17 = vsub.f32 1.0, %v3233_v13  ;;  %v606_v36 = vmul.f32 0.0, %v3233_v13  ;;  %1454 = vperm.xlu1 %3101, %v1452_v57  }
 0x153   :  { %v602_v10 = vadd.f32 %v601_v4, %v277_v63  ;;  %v2576_v63 = vsel %vm2575_vm11, 1, %v3408_v0 }
 0x155   :  { %3234 = vtanh.f32 %v602_v10 }
 0x156   :  { %2016 = vperm.xlu1 %3101, %v2014_v58  }
 0x15a   :  { %2578 = vperm.xlu1 %3101, %v2576_v63   ;;  %v893_v63 = vpop.permute.xlu0 %892 }
 0x15b   :  { %vm894_vm12 = vcmp.eq.s32.totalorder %v893_v63, 1  ;;  %v3759_v63 = vld [vmem:[#allocation9] ss:$12 sps:$4 sm:$0xff]  }
 0x15f   :  { %v3235_v26 = vpop.eup %3234 }
 0x160   :  { %v605_v33 = vmul.f32 %v3235_v26, %v604_v17 }
 0x162   :  { %v607_v39 = vadd.f32 %v606_v36, %v605_v33 }
 0x164   :  { %v3669_v41 = vsel %vm614_vm6, %v607_v39, 0.0  ;;  %v2833_v45 = vpack.c.bf16 %v607_v39, %v607_v39 }
 0x165   :  { %v616_v42 = vpack.c.bf16 %v3669_v41, %v3669_v41 }
 0x166   :  { %2834 = vmatmul.mubr.msk.bf16.vlgmr.msra.gmra.mrb[20].mxu0 %vm2832_vm7, %v2833_v45  ;;  %2965 = vmatmul.mubr.msk.bf16.vlgmr.msra.gmra.mrb[12].mxu1 %vm2832_vm7, %v2833_v45 }
 0x167   :  { %617 = vst [vmem:[#allocation10] sm:$0xf] %v616_v42  ;;  %1066 = vmatpush1.bf16.msra.mxu0 %v3499_v7  ;;  %1097 = vmatprep.mubr.bf16.mxu0 %v3408_v0 }
 0x168   :  { %1067 = vmatprep.subr.bf16.mxu0 %v3502_v8  ;;  %2984 = vmatprep.mubr.msk.bf16.mxu1 %vm3410_vm5, %v3409_v20 }
 0x169   :  { %2969 = vmatpush3.bf16.msra.mxu1 %v3154_v2 }
 0x16a   :  { %2970 = vmatprep.subr.bf16.mxu1 %v3409_v20 }
 0x16b   :  { %1068 = vmatpush1.bf16.msra.mxu0 %v3505_v9 }
 0x16c   :  { %1069 = vmatprep.subr.bf16.mxu0 %v3510_v11 }
 0x16d   :  { %2971 = vmatpush3.bf16.msra.mxu1 %v3155_v25 }
 0x16e   :  { %2972 = vmatprep.subr.bf16.mxu1 %v3409_v20 }
 0x16f   :  { %1070 = vmatpush1.bf16.msra.mxu0 %v3513_v14 }
 0x170   :  { %1071 = vmatprep.subr.bf16.mxu0 %v3516_v15 }
 0x171   :  { %2973 = vmatpush3.bf16.msra.mxu1 %v3156_v47 }
 0x172   :  { %2974 = vmatprep.subr.bf16.mxu1 %v3409_v20 }
 0x173   :  { %1072 = vmatpush1.bf16.msra.mxu0 %v3518_v16 }
 0x174   :  { %1073 = vmatprep.subr.bf16.mxu0 %v3524_v19 }
 0x175   :  { %2975 = vmatpush3.bf16.msra.mxu1 %v3157_v49 }
 0x176   :  { %2976 = vmatprep.subr.bf16.mxu1 %v3409_v20 }
 0x177   :  { %1074 = vmatpush1.bf16.msra.mxu0 %v3530_v22 }
 0x178   :  { %1075 = vmatprep.subr.bf16.mxu0 %v3534_v23 }
 0x179   :  { %2977 = vmatpush3.bf16.msra.mxu1 %v3158_v51 }
 0x17a   :  { %2978 = vmatprep.subr.bf16.mxu1 %v3409_v20 }
 0x17b   :  { %1076 = vmatpush1.bf16.msra.mxu0 %v3536_v24 }
 0x17c   :  { %1077 = vmatprep.subr.bf16.mxu0 %v3541_v27 }
 0x17d   :  { %2979 = vmatpush3.bf16.msra.mxu1 %v3159_v53 }
 0x17e   :  { %2980 = vmatprep.subr.bf16.mxu1 %v3409_v20 }
 0x17f   :  { %1078 = vmatpush1.bf16.msra.mxu0 %v3554_v30 }
 0x180   :  { %1079 = vmatprep.subr.bf16.mxu0 %v3561_v35 }
 0x183   :  { %1080 = vmatpush1.bf16.msra.mxu0 %v3568_v37 }
 0x184   :  { %1346 = vmatprep.subr.bf16.mxu0 %v3496_v6  ;;  %v3160_v6 = vld [vmem:[#allocation9 + $0x98] ss:$12 sps:$4 sm:$0xff]  }
 0x185   :  { %2981 = vmatpush3.bf16.msra.mxu1 %v3160_v6 }
 0x186   :  { %2982 = vmatprep.subr.bf16.mxu1 %v3409_v20 }
 0x189   :  { %2983 = vmatpush3.bf16.msra.mxu1 %v3161_v59 }
 0x18a   :  { %2988 = vmatprep.subr.bf16.mxu1 %v3409_v20 }
 0x239   :  { %v818_v4 = vpop.f32.mrb[20].mxu0  ;;  %v859_v10 = vpop.f32.mrb[12].mxu1 }
 0x23a   :  { %v865_v13 = vadd.f32 %v818_v4, %v3611_v60  ;;  %v820_v17 = vpop.f32.mrb[21].mxu0  ;;  %v2966_v26 = vpop.f32.mrb[13].mxu1  ;;  %v879_v51 = vadd.f32 %v3665_v55, %v859_v10 }
 0x23b   :  { %v866_v31 = vadd.f32 %v820_v17, %v3613_v62  ;;  %v822_v33 = vpop.f32.mrb[22].mxu0  ;;  %v862_v36 = vpop.f32.mrb[14].mxu1 }
 0x23c   :  { %v2674_v39 = vmul.f32 -1.442695, %v865_v13  ;;  %v823_v45 = vpop.f32.mrb[23].mxu0  ;;  %v2967_v42 = vpop.f32.mrb[15].mxu1 }
 0x23d   :  { %v2675_v2 = vmul.f32 -1.442695, %v866_v31 }
 0x23e   :  { %3236 = vpow2.f32 %v2674_v39 }
 0x23f   :  { %3238 = vpow2.f32 %v2675_v2 }
 0x248   :  { %v3237_v28 = vpop.eup %3236 }
 0x249   :  { %v873_v25 = vadd.f32 1.0, %v3237_v28  ;;  %v3239_v47 = vpop.eup %3238 }
 0x24a   :  { %v874_v49 = vadd.f32 1.0, %v3239_v47 }
 0x24b   :  { %3240 = vrcp.f32 %v873_v25 }
 0x24c   :  { %3242 = vrcp.f32 %v874_v49 }
 0x255   :  { %v3241_v60 = vpop.eup %3240 }
 0x256   :  { %v880_v53 = vmul.f32 %v3241_v60, %v879_v51  ;;  %v3243_v6 = vpop.eup %3242  ;;  %v1174_v60 = vpop.permute.xlu1 %1173 }
 0x257   :  { %v883_v59 = vsub.f32 1.0, %v3243_v6  ;;  %v885_v57 = vmul.f32 %v3243_v6, %v3669_v41  ;;  %vm1175_vm13 = vcmp.eq.s32.totalorder %v1174_v60, 1 }
 0x258   :  { %v881_v62 = vadd.f32 %v880_v53, %v3632_v32 }
 0x25a   :  { %3244 = vtanh.f32 %v881_v62 }
 0x264   :  { %v3245_v56 = vpop.eup %3244 }
 0x265   :  { %v884_v58 = vmul.f32 %v3245_v56, %v883_v59 }
 0x267   :  { %v886_v4 = vadd.f32 %v885_v57, %v884_v58 }
 0x269   :  { %v895_v13 = vsel %vm894_vm12, %v886_v4, 0.0  ;;  %v3714_v17 = vsel %vm894_vm12, %v886_v4, %v3669_v41  ;;  %v3173_v4 = vld [vmem:[#allocation9 + $0x8] ss:$12 sps:$4 sm:$0xff]  }
 0x26a   :  { %v896_v10 = vpack.c.bf16 %v895_v13, %v895_v13  ;;  %v904_v26 = vpack.c.bf16 %v3714_v17, %v3714_v17  ;;  %v3763_v13 = vld [vmem:[#allocation9 + $0x1c] ss:$12 sps:$4 sm:$0xff]  }
 0x26c   :  { %898 = vst [vmem:[#allocation10 + $0x4] sm:$0xf] %v896_v10  ;;  %1098 = vmatmul.mubr.bf16.vlgmr.msra.gmra.mrb[24].mxu0 %v904_v26  ;;  %2985 = vmatmul.mubr.bf16.vlgmr.msra.gmra.mrb[16].mxu1 %v904_v26  ;;  %v3177_v10 = vld [vmem:[#allocation9 + $0x20] ss:$12 sps:$4 sm:$0xff]  }
 0x26d   :  { %1347 = vmatpush1.bf16.msra.mxu0 %v3499_v7  ;;  %1378 = vmatprep.mubr.bf16.mxu0 %v3408_v0  ;;  %v3162_v7 = vld [vmem:[#allocation9 + $0x8] ss:$12 sps:$4 sm:$0xff]  }
 0x26e   :  { %1348 = vmatprep.subr.bf16.mxu0 %v3502_v8  ;;  %3004 = vmatprep.mubr.msk.bf16.mxu1 %vm3410_vm5, %v3409_v20  ;;  %v3163_v8 = vld [vmem:[#allocation9 + $0x20] ss:$12 sps:$4 sm:$0xff]  }
 0x26f   :  { %2989 = vmatpush3.bf16.msra.mxu1 %v3162_v7  ;;  %v3770_v26 = vld [vmem:[#allocation9 + $0x34] ss:$12 sps:$4 sm:$0xff]   ;;  %v3773_v7 = vld [vmem:[#allocation9 + $0x30] ss:$12 sps:$4 sm:$0xff]  }
 0x270   :  { %2990 = vmatprep.subr.bf16.mxu1 %v3409_v20 }
 0x271   :  { %1349 = vmatpush1.bf16.msra.mxu0 %v3505_v9  ;;  %v3164_v9 = vld [vmem:[#allocation9 + $0x38] ss:$12 sps:$4 sm:$0xff]  }
 0x272   :  { %1350 = vmatprep.subr.bf16.mxu0 %v3510_v11  ;;  %v3165_v11 = vld [vmem:[#allocation9 + $0x50] ss:$12 sps:$4 sm:$0xff]  }
 0x273   :  { %2991 = vmatpush3.bf16.msra.mxu1 %v3163_v8  ;;  %v3181_v8 = vld [vmem:[#allocation9 + $0x38] ss:$12 sps:$4 sm:$0xff]  }
 0x274   :  { %2992 = vmatprep.subr.bf16.mxu1 %v3409_v20 }
 0x275   :  { %1351 = vmatpush1.bf16.msra.mxu0 %v3513_v14  ;;  %v3166_v14 = vld [vmem:[#allocation9 + $0x68] ss:$12 sps:$4 sm:$0xff]  }
 0x276   :  { %1352 = vmatprep.subr.bf16.mxu0 %v3516_v15  ;;  %v3167_v15 = vld [vmem:[#allocation9 + $0x80] ss:$12 sps:$4 sm:$0xff]  }
 0x277   :  { %2993 = vmatpush3.bf16.msra.mxu1 %v3164_v9  ;;  %v3777_v9 = vld [vmem:[#allocation9 + $0x4c] ss:$12 sps:$4 sm:$0xff]  }
 0x278   :  { %2994 = vmatprep.subr.bf16.mxu1 %v3409_v20 }
 0x279   :  { %1353 = vmatpush1.bf16.msra.mxu0 %v3518_v16  ;;  %v3168_v16 = vld [vmem:[#allocation9 + $0x98] ss:$12 sps:$4 sm:$0xff]  }
 0x27a   :  { %1354 = vmatprep.subr.bf16.mxu0 %v3524_v19  ;;  %v3169_v19 = vld [vmem:[#allocation9 + $0xb0] ss:$12 sps:$4 sm:$0xff]  }
 0x27b   :  { %2995 = vmatpush3.bf16.msra.mxu1 %v3165_v11  ;;  %v3780_v11 = vld [vmem:[#allocation9 + $0x48] ss:$12 sps:$4 sm:$0xff]  }
 0x27c   :  { %2996 = vmatprep.subr.bf16.mxu1 %v3409_v20 }
 0x27d   :  { %1355 = vmatpush1.bf16.msra.mxu0 %v3530_v22 }
 0x27e   :  { %1356 = vmatprep.subr.bf16.mxu0 %v3534_v23 }
 0x27f   :  { %2997 = vmatpush3.bf16.msra.mxu1 %v3166_v14  ;;  %v3185_v14 = vld [vmem:[#allocation9 + $0x50] ss:$12 sps:$4 sm:$0xff]  }
 0x280   :  { %2998 = vmatprep.subr.bf16.mxu1 %v3409_v20 }
 0x281   :  { %1357 = vmatpush1.bf16.msra.mxu0 %v3536_v24 }
 0x282   :  { %1358 = vmatprep.subr.bf16.mxu0 %v3541_v27 }
 0x283   :  { %2999 = vmatpush3.bf16.msra.mxu1 %v3167_v15  ;;  %v3784_v15 = vld [vmem:[#allocation9 + $0x60] ss:$12 sps:$4 sm:$0xff]  }
 0x284   :  { %3000 = vmatprep.subr.bf16.mxu1 %v3409_v20 }
 0x285   :  { %1359 = vmatpush1.bf16.msra.mxu0 %v3554_v30 }
 0x286   :  { %1360 = vmatprep.subr.bf16.mxu0 %v3561_v35 }
 0x287   :  { %3001 = vmatpush3.bf16.msra.mxu1 %v3168_v16  ;;  %v3786_v16 = vld [vmem:[#allocation9 + $0x64] ss:$12 sps:$4 sm:$0xff]  }
 0x288   :  { %3002 = vmatprep.subr.bf16.mxu1 %v3409_v20 }
 0x289   :  { %1361 = vmatpush1.bf16.msra.mxu0 %v3568_v37 }
 0x28b   :  { %3003 = vmatpush3.bf16.msra.mxu1 %v3169_v19  ;;  %v3189_v19 = vld [vmem:[#allocation9 + $0x68] ss:$12 sps:$4 sm:$0xff]  }
 0x28c   :  { %3008 = vmatprep.subr.bf16.mxu1 %v3409_v20 }
 0x33f   :  { %v1099_v22 = vpop.f32.mrb[24].mxu0  ;;  %v1140_v23 = vpop.f32.mrb[16].mxu1 }
 0x340   :  { %v1146_v24 = vadd.f32 %v1099_v22, %v3617_v3  ;;  %v1101_v27 = vpop.f32.mrb[25].mxu0  ;;  %v2986_v30 = vpop.f32.mrb[17].mxu1  ;;  %v1160_v28 = vadd.f32 %v3665_v55, %v1140_v23  ;;  %v3789_v22 = vld [vmem:[#allocation9 + $0x7c] ss:$12 sps:$4 sm:$0xff]   ;;  %v3793_v23 = vld [vmem:[#allocation9 + $0x78] ss:$12 sps:$4 sm:$0xff]  }
 0x341   :  { %v1147_v35 = vadd.f32 %v1101_v27, %v3619_v5  ;;  %v1103_v37 = vpop.f32.mrb[26].mxu0  ;;  %v1143_v32 = vpop.f32.mrb[18].mxu1  ;;  %v3797_v27 = vld [vmem:[#allocation9 + $0x94] ss:$12 sps:$4 sm:$0xff]   ;;  %v3800_v30 = vld [vmem:[#allocation9 + $0x90] ss:$12 sps:$4 sm:$0xff]  }
 0x342   :  { %v2700_v41 = vmul.f32 -1.442695, %v1146_v24  ;;  %v1104_v31 = vpop.f32.mrb[27].mxu0  ;;  %v2987_v33 = vpop.f32.mrb[19].mxu1  ;;  %v3193_v24 = vld [vmem:[#allocation9 + $0x80] ss:$12 sps:$4 sm:$0xff]  }
 0x343   :  { %v2701_v36 = vmul.f32 -1.442695, %v1147_v35  ;;  %v3197_v35 = vld [vmem:[#allocation9 + $0x98] ss:$12 sps:$4 sm:$0xff]   ;;  %v3807_v32 = vld [vmem:[#allocation9 + $0xa8] ss:$12 sps:$4 sm:$0xff]  }
 0x344   :  { %3246 = vpow2.f32 %v2700_v41  ;;  %v3804_v37 = vld [vmem:[#allocation9 + $0xac] ss:$12 sps:$4 sm:$0xff]   ;;  %v3201_v41 = vld [vmem:[#allocation9 + $0xb0] ss:$12 sps:$4 sm:$0xff]  }
 0x345   :  { %3248 = vpow2.f32 %v2701_v36 }
 0x34e   :  { %v3247_v39 = vpop.eup %3246 }
 0x34f   :  { %v1154_v45 = vadd.f32 1.0, %v3247_v39  ;;  %v3249_v42 = vpop.eup %3248 }
 0x350   :  { %v1155_v2 = vadd.f32 1.0, %v3249_v42 }
 0x351   :  { %3250 = vrcp.f32 %v1154_v45 }
 0x352   :  { %3252 = vrcp.f32 %v1155_v2 }
 0x35b   :  { %v3251_v3 = vpop.eup %3250 }
 0x35c   :  { %v1161_v25 = vmul.f32 %v3251_v3, %v1160_v28  ;;  %v3253_v47 = vpop.eup %3252 }
 0x35d   :  { %v1164_v49 = vsub.f32 1.0, %v3253_v47  ;;  %v1166_v62 = vmul.f32 %v3253_v47, %v3714_v17 }
 0x35e   :  { %v1162_v5 = vadd.f32 %v1161_v25, %v3626_v21  ;;  %v3757_v21 = vld [vmem:[#allocation9 + $0x4] ss:$12 sps:$4 sm:$0xff]  }
 0x35f   :  { %1627 = vmatprep.subr.bf16.mxu0 %v3757_v21 }
 0x360   :  { %3254 = vtanh.f32 %v1162_v5 }
 0x36a   :  { %v3255_v51 = vpop.eup %3254 }
 0x36b   :  { %v1165_v53 = vmul.f32 %v3255_v51, %v1164_v49 }
 0x36d   :  { %v1167_v6 = vadd.f32 %v1166_v62, %v1165_v53 }
 0x36f   :  { %v1176_v59 = vsel %vm1175_vm13, %v1167_v6, 0.0  ;;  %v3750_v56 = vsel %vm1175_vm13, %v1167_v6, %v3714_v17  ;;  %v3766_v17 = vld [vmem:[#allocation9 + $0x18] ss:$12 sps:$4 sm:$0xff]  }
 0x370   :  { %v1177_v57 = vpack.c.bf16 %v1176_v59, %v1176_v59  ;;  %v1185_v58 = vpack.c.bf16 %v3750_v56, %v3750_v56 }
 0x372   :  { %1179 = vst [vmem:[#allocation10 + $0x8] sm:$0xf] %v1177_v57  ;;  %1379 = vmatmul.mubr.bf16.vlgmr.msra.gmra.mrb[28].mxu0 %v1185_v58  ;;  %3005 = vmatmul.mubr.bf16.vlgmr.msra.gmra.mrb[20].mxu1 %v1185_v58 }
 0x373   :  { %1659 = vmatprep.mubr.bf16.mxu0 %v3408_v0  ;;  %3024 = vmatprep.mubr.msk.bf16.mxu1 %vm3410_vm5, %v3409_v20 }
 0x374   :  { %1628 = vmatpush1.bf16.msra.mxu0 %v3759_v63  ;;  %3009 = vmatpush3.bf16.msra.mxu1 %v3173_v4 }
 0x375   :  { %3010 = vmatprep.subr.bf16.mxu1 %v3409_v20  ;;  %1629 = vmatprep.subr.bf16.mxu0 %v3763_v13 }
 0x378   :  { %1630 = vmatpush1.bf16.msra.mxu0 %v3766_v17  ;;  %3011 = vmatpush3.bf16.msra.mxu1 %v3177_v10 }
 0x379   :  { %3012 = vmatprep.subr.bf16.mxu1 %v3409_v20  ;;  %1631 = vmatprep.subr.bf16.mxu0 %v3770_v26 }
 0x37c   :  { %1632 = vmatpush1.bf16.msra.mxu0 %v3773_v7  ;;  %3013 = vmatpush3.bf16.msra.mxu1 %v3181_v8  ;;  %v1455_v8 = vpop.permute.xlu1 %1454 }
 0x37d   :  { %3014 = vmatprep.subr.bf16.mxu1 %v3409_v20  ;;  %1633 = vmatprep.subr.bf16.mxu0 %v3777_v9  ;;  %vm1456_vm14 = vcmp.eq.s32.totalorder %v1455_v8, 1 }
 0x380   :  { %1634 = vmatpush1.bf16.msra.mxu0 %v3780_v11  ;;  %3015 = vmatpush3.bf16.msra.mxu1 %v3185_v14 }
 0x381   :  { %3016 = vmatprep.subr.bf16.mxu1 %v3409_v20  ;;  %1635 = vmatprep.subr.bf16.mxu0 %v3786_v16 }
 0x384   :  { %1636 = vmatpush1.bf16.msra.mxu0 %v3784_v15  ;;  %3017 = vmatpush3.bf16.msra.mxu1 %v3189_v19 }
 0x385   :  { %1637 = vmatprep.subr.bf16.mxu0 %v3789_v22  ;;  %3018 = vmatprep.subr.bf16.mxu1 %v3409_v20 }
 0x388   :  { %1638 = vmatpush1.bf16.msra.mxu0 %v3793_v23  ;;  %3019 = vmatpush3.bf16.msra.mxu1 %v3193_v24 }
 0x389   :  { %1639 = vmatprep.subr.bf16.mxu0 %v3797_v27  ;;  %3020 = vmatprep.subr.bf16.mxu1 %v3409_v20 }
 0x38c   :  { %1640 = vmatpush1.bf16.msra.mxu0 %v3800_v30  ;;  %3021 = vmatpush3.bf16.msra.mxu1 %v3197_v35 }
 0x38d   :  { %1641 = vmatprep.subr.bf16.mxu0 %v3804_v37  ;;  %3022 = vmatprep.subr.bf16.mxu1 %v3409_v20 }
 0x390   :  { %1642 = vmatpush1.bf16.msra.mxu0 %v3807_v32  ;;  %3023 = vmatpush3.bf16.msra.mxu1 %v3201_v41 }
 0x391   :  { %1908 = vmatprep.subr.bf16.mxu0 %v3757_v21  ;;  %3028 = vmatprep.subr.bf16.mxu1 %v3409_v20 }
 0x445   :  { %v1380_v31 = vpop.f32.mrb[28].mxu0  ;;  %v1421_v33 = vpop.f32.mrb[20].mxu1 }
 0x446   :  { %v1427_v36 = vadd.f32 %v1380_v31, %v3621_v12  ;;  %v1382_v39 = vpop.f32.mrb[29].mxu0  ;;  %v3006_v45 = vpop.f32.mrb[21].mxu1  ;;  %v1441_v62 = vadd.f32 %v3665_v55, %v1421_v33  ;;  %v3204_v31 = vld [vmem:[#allocation9 + $0x38] ss:$12 sps:$4 sm:$0xff]   ;;  %v3205_v33 = vld [vmem:[#allocation9 + $0x50] ss:$12 sps:$4 sm:$0xff]  }
 0x447   :  { %v1428_v42 = vadd.f32 %v1382_v39, %v3623_v18  ;;  %v1384_v2 = vpop.f32.mrb[30].mxu0  ;;  %v1424_v28 = vpop.f32.mrb[22].mxu1  ;;  %v3207_v39 = vld [vmem:[#allocation9 + $0x80] ss:$12 sps:$4 sm:$0xff]   ;;  %v3208_v45 = vld [vmem:[#allocation9 + $0x98] ss:$12 sps:$4 sm:$0xff]  }
 0x448   :  { %v2726_v3 = vmul.f32 -1.442695, %v1427_v36  ;;  %v1385_v25 = vpop.f32.mrb[31].mxu0  ;;  %v3007_v5 = vpop.f32.mrb[23].mxu1  ;;  %v3206_v36 = vld [vmem:[#allocation9 + $0x68] ss:$12 sps:$4 sm:$0xff]  }
 0x449   :  { %v2727_v47 = vmul.f32 -1.442695, %v1428_v42  ;;  %v3209_v42 = vld [vmem:[#allocation9 + $0xb0] ss:$12 sps:$4 sm:$0xff]  }
 0x44a   :  { %3256 = vpow2.f32 %v2726_v3 }
 0x44b   :  { %3258 = vpow2.f32 %v2727_v47 }
 0x454   :  { %v3257_v49 = vpop.eup %3256 }
 0x455   :  { %v1435_v51 = vadd.f32 1.0, %v3257_v49  ;;  %v3259_v60 = vpop.eup %3258 }
 0x456   :  { %v1436_v53 = vadd.f32 1.0, %v3259_v60 }
 0x457   :  { %3260 = vrcp.f32 %v1435_v51 }
 0x458   :  { %3262 = vrcp.f32 %v1436_v53 }
 0x461   :  { %v3261_v12 = vpop.eup %3260 }
 0x462   :  { %v1442_v6 = vmul.f32 %v3261_v12, %v1441_v62  ;;  %v3263_v59 = vpop.eup %3262 }
 0x463   :  { %v1445_v57 = vsub.f32 1.0, %v3263_v59  ;;  %v1447_v4 = vmul.f32 %v3263_v59, %v3750_v56 }
 0x464   :  { %v1443_v18 = vadd.f32 %v1442_v6, %v3629_v29  ;;  %v3202_v29 = vld [vmem:[#allocation9 + $0x8] ss:$12 sps:$4 sm:$0xff]  }
 0x466   :  { %3264 = vtanh.f32 %v1443_v18 }
 0x470   :  { %v3265_v58 = vpop.eup %3264 }
 0x471   :  { %v1446_v10 = vmul.f32 %v3265_v58, %v1445_v57 }
 0x473   :  { %v1448_v14 = vadd.f32 %v1447_v4, %v1446_v10 }
 0x475   :  { %v1457_v19 = vsel %vm1456_vm14, %v1448_v14, 0.0  ;;  %v3820_v24 = vsel %vm1456_vm14, %v1448_v14, %v3750_v56  ;;  %v3203_v56 = vld [vmem:[#allocation9 + $0x20] ss:$12 sps:$4 sm:$0xff]  }
 0x476   :  { %v1458_v35 = vpack.c.bf16 %v1457_v19, %v1457_v19  ;;  %v1466_v41 = vpack.c.bf16 %v3820_v24, %v3820_v24 }
 0x478   :  { %1460 = vst [vmem:[#allocation10 + $0xc] sm:$0xf] %v1458_v35  ;;  %1660 = vmatmul.mubr.bf16.vlgmr.msra.gmra.mrb[32].mxu0 %v1466_v41  ;;  %3025 = vmatmul.mubr.bf16.vlgmr.msra.gmra.mrb[24].mxu1 %v1466_v41  ;;  %v1736_v41 = vpop.permute.xlu0 %1735 }
 0x479   :  { %1909 = vmatpush1.bf16.msra.mxu0 %v3759_v63  ;;  %1940 = vmatprep.mubr.bf16.mxu0 %v3408_v0  ;;  %vm1737_vm15 = vcmp.eq.s32.totalorder %v1736_v41, 1  ;;  %v2017_v41 = vpop.permute.xlu1 %2016 }
 0x47a   :  { %1910 = vmatprep.subr.bf16.mxu0 %v3763_v13  ;;  %3044 = vmatprep.mubr.msk.bf16.mxu1 %vm3410_vm5, %v3409_v20  ;;  %vm2018_vm0 = vcmp.eq.s32.totalorder %v2017_v41, 1 }
 0x47b   :  { %3029 = vmatpush3.bf16.msra.mxu1 %v3202_v29 }
 0x47c   :  { %3030 = vmatprep.subr.bf16.mxu1 %v3409_v20 }
 0x47d   :  { %1911 = vmatpush1.bf16.msra.mxu0 %v3766_v17 }
 0x47e   :  { %1912 = vmatprep.subr.bf16.mxu0 %v3770_v26 }
 0x47f   :  { %3031 = vmatpush3.bf16.msra.mxu1 %v3203_v56 }
 0x480   :  { %3032 = vmatprep.subr.bf16.mxu1 %v3409_v20 }
 0x481   :  { %1913 = vmatpush1.bf16.msra.mxu0 %v3773_v7 }
 0x482   :  { %1914 = vmatprep.subr.bf16.mxu0 %v3777_v9 }
 0x483   :  { %3033 = vmatpush3.bf16.msra.mxu1 %v3204_v31 }
 0x484   :  { %3034 = vmatprep.subr.bf16.mxu1 %v3409_v20 }
 0x485   :  { %1915 = vmatpush1.bf16.msra.mxu0 %v3780_v11 }
 0x486   :  { %1916 = vmatprep.subr.bf16.mxu0 %v3786_v16 }
 0x487   :  { %3035 = vmatpush3.bf16.msra.mxu1 %v3205_v33 }
 0x488   :  { %3036 = vmatprep.subr.bf16.mxu1 %v3409_v20 }
 0x489   :  { %1917 = vmatpush1.bf16.msra.mxu0 %v3784_v15 }
 0x48a   :  { %1918 = vmatprep.subr.bf16.mxu0 %v3789_v22 }
 0x48b   :  { %3037 = vmatpush3.bf16.msra.mxu1 %v3206_v36 }
 0x48c   :  { %3038 = vmatprep.subr.bf16.mxu1 %v3409_v20 }
 0x48d   :  { %1919 = vmatpush1.bf16.msra.mxu0 %v3793_v23 }
 0x48e   :  { %1920 = vmatprep.subr.bf16.mxu0 %v3797_v27 }
 0x48f   :  { %3039 = vmatpush3.bf16.msra.mxu1 %v3207_v39  ;;  %v3212_v39 = vld [vmem:[#allocation9 + $0x38] ss:$12 sps:$4 sm:$0xff]  }
 0x490   :  { %3040 = vmatprep.subr.bf16.mxu1 %v3409_v20 }
 0x491   :  { %1921 = vmatpush1.bf16.msra.mxu0 %v3800_v30 }
 0x492   :  { %1922 = vmatprep.subr.bf16.mxu0 %v3804_v37 }
 0x493   :  { %3041 = vmatpush3.bf16.msra.mxu1 %v3208_v45  ;;  %v3213_v45 = vld [vmem:[#allocation9 + $0x50] ss:$12 sps:$4 sm:$0xff]  }
 0x494   :  { %3042 = vmatprep.subr.bf16.mxu1 %v3409_v20 }
 0x495   :  { %1923 = vmatpush1.bf16.msra.mxu0 %v3807_v32 }
 0x496   :  { %2189 = vmatprep.subr.bf16.mxu0 %v3757_v21 }
 0x497   :  { %3043 = vmatpush3.bf16.msra.mxu1 %v3209_v42  ;;  %v3214_v42 = vld [vmem:[#allocation9 + $0x68] ss:$12 sps:$4 sm:$0xff]  }
 0x498   :  { %3048 = vmatprep.subr.bf16.mxu1 %v3409_v20 }
 0x54b   :  { %v1661_v2 = vpop.f32.mrb[32].mxu0  ;;  %v1702_v28 = vpop.f32.mrb[24].mxu1 }
 0x54c   :  { %v1708_v3 = vadd.f32 %v1661_v2, %v3634_v34  ;;  %v1663_v25 = vpop.f32.mrb[33].mxu0  ;;  %v3026_v5 = vpop.f32.mrb[25].mxu1  ;;  %v1722_v58 = vadd.f32 %v3665_v55, %v1702_v28  ;;  %v3215_v2 = vld [vmem:[#allocation9 + $0x80] ss:$12 sps:$4 sm:$0xff]   ;;  %v3217_v28 = vld [vmem:[#allocation9 + $0xb0] ss:$12 sps:$4 sm:$0xff]  }
 0x54d   :  { %v1709_v47 = vadd.f32 %v1663_v25, %v3636_v38  ;;  %v1665_v49 = vpop.f32.mrb[34].mxu0  ;;  %v1705_v51 = vpop.f32.mrb[26].mxu1 }
 0x54e   :  { %v2752_v60 = vmul.f32 -1.442695, %v1708_v3  ;;  %v1666_v53 = vpop.f32.mrb[35].mxu0  ;;  %v3027_v62 = vpop.f32.mrb[27].mxu1 }
 0x54f   :  { %v2753_v12 = vmul.f32 -1.442695, %v1709_v47 }
 0x550   :  { %3266 = vpow2.f32 %v2752_v60 }
 0x551   :  { %3268 = vpow2.f32 %v2753_v12 }
 0x55a   :  { %v3267_v6 = vpop.eup %3266 }
 0x55b   :  { %v1716_v18 = vadd.f32 1.0, %v3267_v6  ;;  %v3269_v59 = vpop.eup %3268 }
 0x55c   :  { %v1717_v57 = vadd.f32 1.0, %v3269_v59 }
 0x55d   :  { %3270 = vrcp.f32 %v1716_v18 }
 0x55e   :  { %3272 = vrcp.f32 %v1717_v57 }
 0x567   :  { %v3271_v34 = vpop.eup %3270 }
 0x568   :  { %v1723_v4 = vmul.f32 %v3271_v34, %v1722_v58  ;;  %v3273_v10 = vpop.eup %3272 }
 0x569   :  { %v1726_v8 = vsub.f32 1.0, %v3273_v10  ;;  %v1728_v19 = vmul.f32 %v3273_v10, %v3820_v24 }
 0x56a   :  { %v1724_v38 = vadd.f32 %v1723_v4, %v3646_v46  ;;  %v3210_v46 = vld [vmem:[#allocation9 + $0x8] ss:$12 sps:$4 sm:$0xff]  }
 0x56c   :  { %3274 = vtanh.f32 %v1724_v38 }
 0x576   :  { %v3275_v14 = vpop.eup %3274 }
 0x577   :  { %v1727_v35 = vmul.f32 %v3275_v14, %v1726_v8 }
 0x579   :  { %v1729_v29 = vadd.f32 %v1728_v19, %v1727_v35 }
 0x57b   :  { %v1738_v56 = vsel %vm1737_vm15, %v1729_v29, 0.0  ;;  %v3857_v31 = vsel %vm1737_vm15, %v1729_v29, %v3820_v24  ;;  %v3211_v24 = vld [vmem:[#allocation9 + $0x20] ss:$12 sps:$4 sm:$0xff]  }
 0x57c   :  { %v1739_v33 = vpack.c.bf16 %v1738_v56, %v1738_v56  ;;  %v1747_v36 = vpack.c.bf16 %v3857_v31, %v3857_v31 }
 0x57e   :  { %1741 = vst [vmem:[#allocation10 + $0x10] sm:$0xf] %v1739_v33  ;;  %1941 = vmatmul.mubr.bf16.vlgmr.msra.gmra.mrb[36].mxu0 %v1747_v36  ;;  %3045 = vmatmul.mubr.bf16.vlgmr.msra.gmra.mrb[28].mxu1 %v1747_v36 }
 0x57f   :  { %2190 = vmatpush1.bf16.msra.mxu0 %v3759_v63  ;;  %2221 = vmatprep.mubr.bf16.mxu0 %v3408_v0 }
 0x580   :  { %2191 = vmatprep.subr.bf16.mxu0 %v3763_v13  ;;  %3064 = vmatprep.mubr.msk.bf16.mxu1 %vm3410_vm5, %v3409_v20 }
 0x581   :  { %3049 = vmatpush3.bf16.msra.mxu1 %v3210_v46 }
 0x582   :  { %3050 = vmatprep.subr.bf16.mxu1 %v3409_v20 }
 0x583   :  { %2192 = vmatpush1.bf16.msra.mxu0 %v3766_v17 }
 0x584   :  { %2193 = vmatprep.subr.bf16.mxu0 %v3770_v26 }
 0x585   :  { %3051 = vmatpush3.bf16.msra.mxu1 %v3211_v24 }
 0x586   :  { %3052 = vmatprep.subr.bf16.mxu1 %v3409_v20 }
 0x587   :  { %2194 = vmatpush1.bf16.msra.mxu0 %v3773_v7 }
 0x588   :  { %2195 = vmatprep.subr.bf16.mxu0 %v3777_v9 }
 0x589   :  { %3053 = vmatpush3.bf16.msra.mxu1 %v3212_v39 }
 0x58a   :  { %3054 = vmatprep.subr.bf16.mxu1 %v3409_v20 }
 0x58b   :  { %2196 = vmatpush1.bf16.msra.mxu0 %v3780_v11 }
 0x58c   :  { %2197 = vmatprep.subr.bf16.mxu0 %v3786_v16 }
 0x58d   :  { %3055 = vmatpush3.bf16.msra.mxu1 %v3213_v45 }
 0x58e   :  { %3056 = vmatprep.subr.bf16.mxu1 %v3409_v20 }
 0x58f   :  { %2198 = vmatpush1.bf16.msra.mxu0 %v3784_v15 }
 0x590   :  { %2199 = vmatprep.subr.bf16.mxu0 %v3789_v22 }
 0x591   :  { %3057 = vmatpush3.bf16.msra.mxu1 %v3214_v42 }
 0x592   :  { %3058 = vmatprep.subr.bf16.mxu1 %v3409_v20 }
 0x593   :  { %2200 = vmatpush1.bf16.msra.mxu0 %v3793_v23 }
 0x594   :  { %2201 = vmatprep.subr.bf16.mxu0 %v3797_v27 }
 0x595   :  { %3059 = vmatpush3.bf16.msra.mxu1 %v3215_v2 }
 0x596   :  { %3060 = vmatprep.subr.bf16.mxu1 %v3409_v20 }
 0x597   :  { %2202 = vmatpush1.bf16.msra.mxu0 %v3800_v30 }
 0x598   :  { %2203 = vmatprep.subr.bf16.mxu0 %v3804_v37 }
 0x59b   :  { %2204 = vmatpush1.bf16.msra.mxu0 %v3807_v32 }
 0x59c   :  { %2470 = vmatprep.subr.bf16.mxu0 %v3757_v21  ;;  %v3216_v21 = vld [vmem:[#allocation9 + $0x98] ss:$12 sps:$4 sm:$0xff]  }
 0x59d   :  { %3061 = vmatpush3.bf16.msra.mxu1 %v3216_v21 }
 0x59e   :  { %3062 = vmatprep.subr.bf16.mxu1 %v3409_v20 }
 0x5a1   :  { %3063 = vmatpush3.bf16.msra.mxu1 %v3217_v28 }
 0x5a2   :  { %3068 = vmatprep.subr.bf16.mxu1 %v3409_v20 }
 0x651   :  { %v1942_v3 = vpop.f32.mrb[36].mxu0  ;;  %v1983_v25 = vpop.f32.mrb[28].mxu1 }
 0x652   :  { %v1989_v5 = vadd.f32 %v1942_v3, %v3638_v40  ;;  %v1944_v47 = vpop.f32.mrb[37].mxu0  ;;  %v3046_v49 = vpop.f32.mrb[29].mxu1  ;;  %v2003_v4 = vadd.f32 %v3665_v55, %v1983_v25 }
 0x653   :  { %v1990_v51 = vadd.f32 %v1944_v47, %v3640_v43  ;;  %v1946_v60 = vpop.f32.mrb[38].mxu0  ;;  %v1986_v53 = vpop.f32.mrb[30].mxu1 }
 0x654   :  { %v2778_v62 = vmul.f32 -1.442695, %v1989_v5  ;;  %v1947_v12 = vpop.f32.mrb[39].mxu0  ;;  %v3047_v6 = vpop.f32.mrb[31].mxu1 }
 0x655   :  { %v2779_v18 = vmul.f32 -1.442695, %v1990_v51  ;;  %v2298_v47 = vpop.permute.xlu0 %2297 }
 0x656   :  { %3276 = vpow2.f32 %v2778_v62  ;;  %vm2299_vm1 = vcmp.eq.s32.totalorder %v2298_v47, 1 }
 0x657   :  { %3278 = vpow2.f32 %v2779_v18 }
 0x660   :  { %v3277_v59 = vpop.eup %3276 }
 0x661   :  { %v1997_v57 = vadd.f32 1.0, %v3277_v59  ;;  %v3279_v58 = vpop.eup %3278 }
 0x662   :  { %v1998_v34 = vadd.f32 1.0, %v3279_v58 }
 0x663   :  { %3280 = vrcp.f32 %v1997_v57 }
 0x664   :  { %3282 = vrcp.f32 %v1998_v34 }
 0x66d   :  { %v3281_v40 = vpop.eup %3280 }
 0x66e   :  { %v2004_v38 = vmul.f32 %v3281_v40, %v2003_v4  ;;  %v3283_v10 = vpop.eup %3282 }
 0x66f   :  { %v2007_v8 = vsub.f32 1.0, %v3283_v10  ;;  %v2009_v19 = vmul.f32 %v3283_v10, %v3857_v31 }
 0x670   :  { %v2005_v43 = vadd.f32 %v2004_v38, %v3652_v50  ;;  %v3219_v50 = vld [vmem:[#allocation9 + $0x20] ss:$12 sps:$4 sm:$0xff]  }
 0x672   :  { %3284 = vtanh.f32 %v2005_v43 }
 0x67c   :  { %v3285_v14 = vpop.eup %3284 }
 0x67d   :  { %v2008_v35 = vmul.f32 %v3285_v14, %v2007_v8 }
 0x67f   :  { %v2010_v29 = vadd.f32 %v2009_v19, %v2008_v35 }
 0x681   :  { %v2019_v56 = vsel %vm2018_vm0, %v2010_v29, 0.0  ;;  %v3894_v33 = vsel %vm2018_vm0, %v2010_v29, %v3857_v31 }
 0x682   :  { %v2020_v55 = vpack.c.bf16 %v2019_v56, %v2019_v56  ;;  %v2028_v36 = vpack.c.bf16 %v3894_v33, %v3894_v33 }
 0x684   :  { %2022 = vst [vmem:[#allocation10 + $0x14] sm:$0xf] %v2020_v55  ;;  %2222 = vmatmul.mubr.bf16.vlgmr.msra.gmra.mrb[40].mxu0 %v2028_v36  ;;  %3065 = vmatmul.mubr.bf16.vlgmr.msra.gmra.mrb[32].mxu1 %v2028_v36 }
 0x685   :  { %2471 = vmatpush1.bf16.msra.mxu0 %v3759_v63  ;;  %2502 = vmatprep.mubr.bf16.mxu0 %v3408_v0  ;;  %v3218_v0 = vld [vmem:[#allocation9 + $0x8] ss:$12 sps:$4 sm:$0xff]   ;;  %v3220_v63 = vld [vmem:[#allocation9 + $0x38] ss:$12 sps:$4 sm:$0xff]  }
 0x686   :  { %2472 = vmatprep.subr.bf16.mxu0 %v3763_v13  ;;  %3084 = vmatprep.mubr.msk.bf16.mxu1 %vm3410_vm5, %v3409_v20  ;;  %v3221_v13 = vld [vmem:[#allocation9 + $0x50] ss:$12 sps:$4 sm:$0xff]  }
 0x687   :  { %3069 = vmatpush3.bf16.msra.mxu1 %v3218_v0  ;;  %v2579_v0 = vpop.permute.xlu1 %2578 }
 0x688   :  { %3070 = vmatprep.subr.bf16.mxu1 %v3409_v20  ;;  %vm2580_vm2 = vcmp.eq.s32.totalorder %v2579_v0, 1 }
 0x689   :  { %2473 = vmatpush1.bf16.msra.mxu0 %v3766_v17  ;;  %v3222_v17 = vld [vmem:[#allocation9 + $0x68] ss:$12 sps:$4 sm:$0xff]  }
 0x68a   :  { %2474 = vmatprep.subr.bf16.mxu0 %v3770_v26  ;;  %v3223_v26 = vld [vmem:[#allocation9 + $0x80] ss:$12 sps:$4 sm:$0xff]  }
 0x68b   :  { %3071 = vmatpush3.bf16.msra.mxu1 %v3219_v50 }
 0x68c   :  { %3072 = vmatprep.subr.bf16.mxu1 %v3409_v20 }
 0x68d   :  { %2475 = vmatpush1.bf16.msra.mxu0 %v3773_v7  ;;  %v3224_v7 = vld [vmem:[#allocation9 + $0x98] ss:$12 sps:$4 sm:$0xff]  }
 0x68e   :  { %2476 = vmatprep.subr.bf16.mxu0 %v3777_v9  ;;  %v3225_v9 = vld [vmem:[#allocation9 + $0xb0] ss:$12 sps:$4 sm:$0xff]  }
 0x68f   :  { %3073 = vmatpush3.bf16.msra.mxu1 %v3220_v63 }
 0x690   :  { %3074 = vmatprep.subr.bf16.mxu1 %v3409_v20 }
 0x691   :  { %2477 = vmatpush1.bf16.msra.mxu0 %v3780_v11 }
 0x692   :  { %2478 = vmatprep.subr.bf16.mxu0 %v3786_v16 }
 0x693   :  { %3075 = vmatpush3.bf16.msra.mxu1 %v3221_v13 }
 0x694   :  { %3076 = vmatprep.subr.bf16.mxu1 %v3409_v20 }
 0x695   :  { %2479 = vmatpush1.bf16.msra.mxu0 %v3784_v15 }
 0x696   :  { %2480 = vmatprep.subr.bf16.mxu0 %v3789_v22 }
 0x697   :  { %3077 = vmatpush3.bf16.msra.mxu1 %v3222_v17 }
 0x698   :  { %3078 = vmatprep.subr.bf16.mxu1 %v3409_v20 }
 0x699   :  { %2481 = vmatpush1.bf16.msra.mxu0 %v3793_v23 }
 0x69a   :  { %2482 = vmatprep.subr.bf16.mxu0 %v3797_v27 }
 0x69b   :  { %3079 = vmatpush3.bf16.msra.mxu1 %v3223_v26 }
 0x69c   :  { %3080 = vmatprep.subr.bf16.mxu1 %v3409_v20 }
 0x69d   :  { %2483 = vmatpush1.bf16.msra.mxu0 %v3800_v30 }
 0x69e   :  { %2484 = vmatprep.subr.bf16.mxu0 %v3804_v37 }
 0x69f   :  { %3081 = vmatpush3.bf16.msra.mxu1 %v3224_v7 }
 0x6a0   :  { %3082 = vmatprep.subr.bf16.mxu1 %v3409_v20 }
 0x6a1   :  { %2485 = vmatpush1.bf16.msra.mxu0 %v3807_v32 }
 0x6a3   :  { %3083 = vmatpush3.bf16.msra.mxu1 %v3225_v9 }
 0x757   :  { %v2223_v11 = vpop.f32.mrb[40].mxu0  ;;  %v2264_v15 = vpop.f32.mrb[32].mxu1 }
 0x758   :  { %v2270_v16 = vadd.f32 %v2223_v11, %v3654_v52  ;;  %v2225_v22 = vpop.f32.mrb[41].mxu0  ;;  %v3066_v23 = vpop.f32.mrb[33].mxu1  ;;  %v3306_v52 = vld [vmem:[%s3953_s4] ss:$0 sm:$0xff]  ;;  %s3412_s4 = smov [#allocation10]  }
 0x759   :  { %v2271_v27 = vadd.f32 %v2225_v22, %v3656_v54  ;;  %v2227_v30 = vpop.f32.mrb[42].mxu0  ;;  %v2267_v37 = vpop.f32.mrb[34].mxu1  ;;  %v2284_v2 = vadd.f32 %v3306_v52, %v2264_v15  ;;  %s2592_s16 = sshll.u32 %s3412_s4, 4  ;;  %s2593_s16 = int_to_ptr.vmem [resolvable:$true] %s2592_s16 }
 0x75a   :  { %v2804_v32 = vmul.f32 -1.442695, %v2270_v16  ;;  %v2228_v31 = vpop.f32.mrb[43].mxu0  ;;  %v3067_v46 = vpop.f32.mrb[35].mxu1  ;;  %s3373_s17 = scalar_lea.vmem %s2593_s16, 512  ;;  %p3378_p11 = scmp.lt.s32.totalorder %s2593_s16, %s2593_s16 }
 0x75b   :  { %v2805_v24 = vmul.f32 -1.442695, %v2271_v27  ;;  %p3374_p10 = scmp.ne.s32.totalorder %s2593_s16, %s3373_s17  ;;  %p3379_p12 = scmp.lt.s32.totalorder %s3373_s17, %s3373_s17 }
 0x75c   :  { %3286 = vpow2.f32 %v2804_v32 }
 0x75d   :  { %3288 = vpow2.f32 %v2805_v24  ;;  %p3380_p13 = por %p3379_p12, %p3378_p11 }
 0x75f   :  { %p3381_p0 = pnand %p3380_p13, %p3374_p10 }
 0x766   :  { %v3287_v39 = vpop.eup %3286 }
 0x767   :  { %v2278_v45 = vadd.f32 1.0, %v3287_v39  ;;  %v3289_v20 = vpop.eup %3288 }
 0x768   :  { %v2279_v42 = vadd.f32 1.0, %v3289_v20 }
 0x769   :  { %3290 = vrcp.f32 %v2278_v45 }
 0x76a   :  { %3292 = vrcp.f32 %v2279_v42 }
 0x773   :  { %v3291_v21 = vpop.eup %3290 }
 0x774   :  { %v2285_v54 = vmul.f32 %v3291_v21, %v2284_v2  ;;  %v3293_v3 = vpop.eup %3292 }
 0x775   :  { %v2288_v25 = vsub.f32 1.0, %v3293_v3  ;;  %v2290_v51 = vmul.f32 %v3293_v3, %v3894_v33 }
 0x776   :  { %v2286_v28 = vadd.f32 %v2285_v54, %v3643_v44 }
 0x778   :  { %3294 = vtanh.f32 %v2286_v28 }
 0x782   :  { %v3295_v5 = vpop.eup %3294 }
 0x783   :  { %v2289_v49 = vmul.f32 %v3295_v5, %v2288_v25 }
 0x785   :  { %v2291_v60 = vadd.f32 %v2290_v51, %v2289_v49 }
 0x787   :  { %v2300_v53 = vsel %vm2299_vm1, %v2291_v60, 0.0  ;;  %v2304_v62 = vsel %vm2299_vm1, %v2291_v60, %v3894_v33 }
 0x788   :  { %v2301_v12 = vpack.c.bf16 %v2300_v53, %v2300_v53  ;;  %v2309_v6 = vpack.c.bf16 %v2304_v62, %v2304_v62 }
 0x78a   :  { %2303 = vst [vmem:[#allocation10 + $0x18] sm:$0xf] %v2301_v12  ;;  %2503 = vmatmul.mubr.bf16.vlgmr.msra.gmra.mrb[44].mxu0 %v2309_v6  ;;  %3085 = vmatmul.mubr.bf16.vlgmr.msra.gmra.mrb[36].mxu1 %v2309_v6 }
 0x85d   :  { %v2504_v18 = vpop.f32.mrb[44].mxu0  ;;  %v2545_v44 = vpop.f32.mrb[36].mxu1 }
 0x85e   :  { %v2551_v59 = vadd.f32 %v2504_v18, %v3658_v61  ;;  %v2506_v57 = vpop.f32.mrb[45].mxu0  ;;  %v3086_v58 = vpop.f32.mrb[37].mxu1  ;;  %v2565_v29 = vadd.f32 %v3306_v52, %v2545_v44 }
 0x85f   :  { %v2552_v34 = vadd.f32 %v2506_v57, %v3660_v1  ;;  %v2508_v4 = vpop.f32.mrb[46].mxu0  ;;  %v2548_v40 = vpop.f32.mrb[38].mxu1 }
 0x860   :  { %v2830_v38 = vmul.f32 -1.442695, %v2551_v59  ;;  %v2509_v43 = vpop.f32.mrb[47].mxu0  ;;  %v3087_v10 = vpop.f32.mrb[39].mxu1 }
 0x861   :  { %v2831_v8 = vmul.f32 -1.442695, %v2552_v34 }
 0x862   :  { %3296 = vpow2.f32 %v2830_v38 }
 0x863   :  { %3298 = vpow2.f32 %v2831_v8 }
 0x86c   :  { %v3297_v14 = vpop.eup %3296 }
 0x86d   :  { %v2559_v19 = vadd.f32 1.0, %v3297_v14  ;;  %v3299_v35 = vpop.eup %3298 }
 0x86e   :  { %v2560_v41 = vadd.f32 1.0, %v3299_v35 }
 0x86f   :  { %3300 = vrcp.f32 %v2559_v19 }
 0x870   :  { %3302 = vrcp.f32 %v2560_v41 }
 0x879   :  { %v3301_v56 = vpop.eup %3300 }
 0x87a   :  { %v2566_v61 = vmul.f32 %v3301_v56, %v2565_v29  ;;  %v3303_v1 = vpop.eup %3302 }
 0x87b   :  { %v2569_v55 = vsub.f32 1.0, %v3303_v1  ;;  %v2571_v63 = vmul.f32 %v3303_v1, %v2304_v62 }
 0x87c   :  { %v2567_v33 = vadd.f32 %v2566_v61, %v3649_v48 }
 0x87e   :  { %3304 = vtanh.f32 %v2567_v33 }
 0x888   :  { %v3305_v36 = vpop.eup %3304 }
 0x889   :  { %v2570_v50 = vmul.f32 %v3305_v36, %v2569_v55 }
 0x88b   :  { %v2572_v13 = vadd.f32 %v2571_v63, %v2570_v50 }
 0x88d   :  { %v2581_v17 = vsel %vm2580_vm2, %v2572_v13, 0.0 }
 0x88e   :  { %v2582_v26 = vpack.c.bf16 %v2581_v17, %v2581_v17 }
 0x890   :  { %2584 = vst [vmem:[#allocation10 + $0x1c] sm:$0xf] %v2582_v26 }
 0x891   :  { %3384 = shalt.err (!%p3381_p0)
}
 0x892   :  { %s3385_s20 = scalar_lea.hbm %s3955_s6, 512 }
 0x893   :  { %p3386_p1 = scmp.ne.s32.totalorder %s3955_s6, %s3385_s20  ;;  %p3389_p2 = scmp.lt.u32.totalorder %s3385_s20, %s3955_s6 }
 0x895   :  { %p3391_p3 = pnand %p3389_p2, %p3386_p1 }
 0x897   :  { %3394 = shalt.err (!%p3391_p3)
}
 0x898   :  { %2598 = dma.vmem_to_hbm [thread:$0]  %s2593_s16, 512, %s3955_s6, [#allocation6], %s3405_s1, %s3405_s1, %s3406_s21  }
 0x899   :  { %3399 = dma.done.wait [#allocation6], 512  }
 0x89a   :  { %3400 = vsyncadd [#allocation6], 4294966784 }
 0x89b   :  { %2602 = vsyncpa [#allocation5], 1 }
 0x89c   :  { %2603 = vsyncpa [#allocation8], 1 }
 0x89d   :  { %2604 = vsyncpa [#allocation6], 1 }

</bundles_post_ra>
